<compile_context>
chip_gen: v6e
topology: v6e:2x2x1
jax: 0.10.0
libtpu: 0.0.40
codegen_flags: <defaults>
</compile_context>

<pallas_src>
import jax
import jax.numpy as jnp
from jax.experimental import pallas as pl
from jax.experimental.pallas import tpu as pltpu

SEQ_LEN = 12  # implied by Linear(3*64, 32) after two stride-2 max-pools


# ------------------------------ kernel helpers ------------------------------

def _maxpool2_flat_t(h, c):
    """MaxPool1d(2,2) on an (L*C, bt) channels-last-flat slab -> ((L//2)*C, bt).

    Row index is l*C + c; splitting the leading axis into (L//2, 2, C) and
    reducing over the middle axis never touches the lane axis (C is a
    multiple of 8, so sublane tiles stay aligned) and avoids slice copies.
    """
    lc, bt = h.shape
    l = lc // c
    hr = h.reshape(l // 2, 2, c, bt)
    return jnp.max(hr, axis=1).reshape((l // 2) * c, bt)


# ---------------------------------- kernel ----------------------------------

def dann_kernel(x_ref,
                w1, b1, w2, b2, w3, b3, w4, b4, w5, b5, w6, b6,
                y_ref):
    f32 = jnp.float32
    bf16 = jnp.bfloat16

    def mm(w_ref, h):
        # bf16 x bf16 operands -> single-pass MXU, f32 accumulation.
        return jnp.dot(w_ref[...], h.astype(bf16), preferred_element_type=f32)

    h = x_ref[...]                                                    # (12, bt) f32

    # Conv1(1->16) + ReLU                      (BN1 folded into w2/b2)
    h = jnp.maximum(mm(w1, h) + b1[...], 0.0)                         # (192, bt)
    # Conv2(16->32) + ReLU + MaxPool(2)        (BN2 folded into w3/b3)
    h = jnp.maximum(mm(w2, h) + b2[...], 0.0)                         # (384, bt)
    h = _maxpool2_flat_t(h, 32)                                       # (192, bt)
    # Conv3(32->64) + ReLU + MaxPool(2)        (BN3 folded into w4/b4)
    h = jnp.maximum(mm(w3, h) + b3[...], 0.0)                         # (384, bt)
    h = _maxpool2_flat_t(h, 64)                                       # (192, bt)
    # Conv4(64->64) + ReLU                     (BN4 folded into w5/b5)
    h = jnp.maximum(mm(w4, h) + b4[...], 0.0)                         # (192, bt)
    # Flatten (already (l,c)-flat) + Dropout(id) + Linear(192,32) + Dropout(id) + ReLU
    mmd = jnp.maximum(mm(w5, h) + b5[...], 0.0)                       # (32, bt)
    # Linear(32, 1)
    y = mm(w6, mmd) + b6[...]                                         # (1, bt)
    y_ref[...] = y.reshape(1, 1, -1)                                  # lane-dense output


# --------------------------- parameter preparation ---------------------------

def _fold_bn(gamma, beta, mean, var, eps=1e-5):
    scale = gamma / jnp.sqrt(var + eps)
    shift = beta - mean * scale
    return scale, shift


def _banded_conv_matrix(W, L):
    """Conv1d(k=3, pad=1) as a (L*Cin, L*Cout) matrix on an (l,c)-flat input."""
    Cout, Cin, K = W.shape
    Wt = jnp.transpose(W, (2, 1, 0)).astype(jnp.float32)              # (K, Cin, Cout)
    M = jnp.zeros((L * Cin, L * Cout), jnp.float32)
    for lo in range(L):
        for k in range(K):
            li = lo + k - 1
            if 0 <= li < L:
                M = M.at[li * Cin:(li + 1) * Cin,
                         lo * Cout:(lo + 1) * Cout].set(Wt[k])
    return M


def _prepare_kernel_args(p):
    """Weights in bf16 (MXU operands), biases in f32, BN folded on the host."""
    hp = jax.lax.Precision.HIGHEST
    bf16 = jnp.bfloat16
    args = []
    conv_specs = [('W1', 'b1', None,  12,  1, 16),
                  ('W2', 'b2', 'bn1', 12, 16, 32),
                  ('W3', 'b3', 'bn2',  6, 32, 64),
                  ('W4', 'b4', 'bn3',  3, 64, 64)]
    for Wk, bk, bnk, L, Cin, Cout in conv_specs:
        M = _banded_conv_matrix(p[Wk], L)                             # (L*Cin, L*Cout)
        b_pos = jnp.tile(p[bk].astype(jnp.float32), L)                # (L*Cout,)
        if bnk is not None:
            # Preceding BN (after ReLU): h_in = s*g + t  ->  fold s into rows
            # of M and t into a per-position bias (exact; padding makes it
            # position-dependent).
            s, t = _fold_bn(*p[bnk])
            b_pos = b_pos + jnp.dot(jnp.tile(t, L), M, precision=hp)
            M = jnp.tile(s, L)[:, None] * M
        args += [M.T.astype(bf16),                                    # transposed layout
                 b_pos.reshape(-1, 1).astype(jnp.float32)]

    # Linear1: permute torch's channel-major Flatten (index c*3+l) into our
    # channels-last (l*64+c) order, then fold BN4.
    W5_lc = (p['W5'].reshape(32, 64, 3).transpose(0, 2, 1)
             .reshape(32, 192).T.astype(jnp.float32))                 # (192, 32)
    s4, t4 = _fold_bn(*p['bn4'])
    b5 = p['b5'] + jnp.dot(jnp.tile(t4, 3), W5_lc, precision=hp)
    W5f = jnp.tile(s4, 3)[:, None] * W5_lc
    args += [W5f.T.astype(bf16), b5.reshape(-1, 1).astype(jnp.float32)]
    args += [p['W6'].astype(bf16), p['b6'].reshape(1, 1).astype(jnp.float32)]
    return args


# ---------------------------------- wrapper ----------------------------------

def _round_up(x, m):
    return (x + m - 1) // m * m


def _cdiv(a, b):
    return -(-a // b)


def _choose_batch_tile(B, batch_tile):
    """128-aligned batch tile; >=2 tiles when B > 128 (v7x megacore); adaptive
    size so last-tile padding stays small."""
    bt_cap = max(128, _round_up(batch_tile, 128))
    B128 = _round_up(B, 128)
    if B128 <= 128:
        bt = 128
    else:
        n_tiles = max(2, _cdiv(B128, bt_cap))
        bt = min(bt_cap, _round_up(_cdiv(B, n_tiles), 128))
    Bp = _round_up(B, bt)
    return bt, Bp, Bp // bt


def dann_forward(src, params, *, batch_tile=1024):
    """Eval-mode DaNN.forward: torch.squeeze(Linear2(Linear1(Flatten(CNN1(src)))))."""
    B = src.shape[0]
    xT = jnp.transpose(src.astype(jnp.float32))                       # (12, B), batch on lanes

    bt, Bp, n_tiles = _choose_batch_tile(B, batch_tile)
    if Bp != B:
        xT = jnp.pad(xT, ((0, 0), (0, Bp - B)))

    args = _prepare_kernel_args(params)
    in_specs = [pl.BlockSpec((SEQ_LEN, bt), lambda i: (0, i))]        # batch-tiled input
    # Weights/biases: constant block index -> fetched once, VMEM-resident.
    in_specs += [pl.BlockSpec(a.shape, lambda i: (0, 0)) for a in args]

    # ~6-8 MB live VMEM per 1024-example tile: under every generation's default
    # scoped budget. Only raise the limit if a caller forces tiles >= 2048
    # (v5e's 16 MiB default would otherwise be tight).
    cp_kwargs = dict(dimension_semantics=("parallel",))
    if bt >= 2048:
        cp_kwargs["vmem_limit_bytes"] = 64 * 1024 * 1024

    out = pl.pallas_call(
        dann_kernel,
        out_shape=jax.ShapeDtypeStruct((n_tiles, 1, bt), jnp.float32),
        grid_spec=pltpu.PrefetchScalarGridSpec(
            num_scalar_prefetch=0,
            grid=(n_tiles,),
            in_specs=in_specs,
            out_specs=pl.BlockSpec((1, 1, bt), lambda i: (i, 0, 0)),
        ),
        compiler_params=pltpu.CompilerParams(**cp_kwargs),
    )(xT, *args)
    return out.reshape(Bp)[:B]


# --------------------------- deterministic params ---------------------------

def init_params(key):
    ks = iter(jax.random.split(key, 32))

    def nrm(shape, scale=0.2):
        return jax.random.normal(next(ks), shape, jnp.float32) * scale

    def bn(c):
        gamma = 1.0 + nrm((c,), 0.1)
        beta = nrm((c,), 0.1)
        mean = nrm((c,), 0.1)
        var = 1.0 + jnp.abs(nrm((c,), 0.1))
        return (gamma, beta, mean, var)

    p = {}
    p['W1'], p['b1'] = nrm((16, 1, 3)), nrm((16,))
    p['W2'], p['b2'] = nrm((32, 16, 3)), nrm((32,))
    p['W3'], p['b3'] = nrm((64, 32, 3)), nrm((64,))
    p['W4'], p['b4'] = nrm((64, 64, 3)), nrm((64,))
    p['bn1'], p['bn2'], p['bn3'], p['bn4'] = bn(16), bn(32), bn(64), bn(64)
    p['W5'], p['b5'] = nrm((32, 192), 0.1), nrm((32,), 0.1)
    p['W6'], p['b6'] = nrm((1, 32), 0.1), nrm((1,), 0.1)
    return p


# ------------------------- pure-JAX reference (NCW) --------------------------

def reference_forward(x, p):
    eps = 1e-5
    hp = jax.lax.Precision.HIGHEST

    def conv(h, W, b):
        out = jax.lax.conv_general_dilated(
            h, W, window_strides=(1,), padding=[(1, 1)],
            dimension_numbers=('NCW', 'OIW', 'NCW'), precision=hp)
        return out + b[None, :, None]

    def bn(h, g, bta, m, v):
        return ((h - m[None, :, None]) / jnp.sqrt(v[None, :, None] + eps)
                * g[None, :, None] + bta[None, :, None])

    def mp(h):
        return jax.lax.reduce_window(h, -jnp.inf, jax.lax.max,
                                     (1, 1, 2), (1, 1, 2), 'VALID')

    h = x[:, None, :]
    h = bn(jnp.maximum(conv(h, p['W1'], p['b1']), 0.0), *p['bn1'])
    h = bn(mp(jnp.maximum(conv(h, p['W2'], p['b2']), 0.0)), *p['bn2'])
    h = bn(mp(jnp.maximum(conv(h, p['W3'], p['b3']), 0.0)), *p['bn3'])
    h = bn(jnp.maximum(conv(h, p['W4'], p['b4']), 0.0), *p['bn4'])
    flat = h.reshape(h.shape[0], -1)                                  # torch Flatten (NCW)
    mmd = jnp.maximum(jnp.dot(flat, p['W5'].T, precision=hp) + p['b5'], 0.0)
    y = jnp.dot(mmd, p['W6'].T, precision=hp) + p['b6']
    return jnp.squeeze(y)


# ------------------------------------ main -----------------------------------

if __name__ == "__main__":
    key = jax.random.PRNGKey(0)
    kp, ks, kt = jax.random.split(key, 3)

    params = init_params(kp)
    B = 8
    src = jax.random.normal(ks, (B, SEQ_LEN), jnp.float32)
    tar = jax.random.normal(kt, (B, SEQ_LEN), jnp.float32)  # unused in eval-mode forward

    y = dann_forward(src, params)
    y = jax.block_until_ready(y)

    y_ref = reference_forward(src, params)
    assert y.shape == (B,)
    assert bool(jnp.all(jnp.isfinite(y)))
    # bf16 MXU operands (f32 accumulation) -> bf16-appropriate tolerance.
    assert bool(jnp.allclose(y, y_ref, rtol=2e-2, atol=2e-2)), (y, y_ref)

    print("KERNEL_OK")
</pallas_src>

<mosaic_0001>
module attributes {stable_mosaic.version = 11 : i64} {
  func.func @dann_kernel(%arg0: i32, %arg1: memref<12x128xf32, #tpu.memory_space<vmem>>, %arg2: memref<192x12xbf16, #tpu.memory_space<vmem>>, %arg3: memref<192x1xf32, #tpu.memory_space<vmem>>, %arg4: memref<384x192xbf16, #tpu.memory_space<vmem>>, %arg5: memref<384x1xf32, #tpu.memory_space<vmem>>, %arg6: memref<384x192xbf16, #tpu.memory_space<vmem>>, %arg7: memref<384x1xf32, #tpu.memory_space<vmem>>, %arg8: memref<192x192xbf16, #tpu.memory_space<vmem>>, %arg9: memref<192x1xf32, #tpu.memory_space<vmem>>, %arg10: memref<32x192xbf16, #tpu.memory_space<vmem>>, %arg11: memref<32x1xf32, #tpu.memory_space<vmem>>, %arg12: memref<1x32xbf16, #tpu.memory_space<vmem>>, %arg13: memref<1x1xf32, #tpu.memory_space<vmem>>, %arg14: memref<1x1x128xf32, #tpu.memory_space<vmem>>) attributes {dimension_semantics = [#tpu.dimension_semantics<parallel>], iteration_bounds = array<i64: 1>, scalar_prefetch = 0 : i64, scratch_operands = 0 : i64, tpu.core_type = #tpu.core_type<tc>, window_params = [{transform_indices = @transform_0, window_bounds = array<i64: 12, 128>}, {pipeline_mode = #tpu.pipeline_mode<synchronous>, transform_indices = @transform_1, window_bounds = array<i64: 192, 12>}, {pipeline_mode = #tpu.pipeline_mode<synchronous>, transform_indices = @transform_2, window_bounds = array<i64: 192, 1>}, {pipeline_mode = #tpu.pipeline_mode<synchronous>, transform_indices = @transform_3, window_bounds = array<i64: 384, 192>}, {pipeline_mode = #tpu.pipeline_mode<synchronous>, transform_indices = @transform_4, window_bounds = array<i64: 384, 1>}, {pipeline_mode = #tpu.pipeline_mode<synchronous>, transform_indices = @transform_5, window_bounds = array<i64: 384, 192>}, {pipeline_mode = #tpu.pipeline_mode<synchronous>, transform_indices = @transform_6, window_bounds = array<i64: 384, 1>}, {pipeline_mode = #tpu.pipeline_mode<synchronous>, transform_indices = @transform_7, window_bounds = array<i64: 192, 192>}, {pipeline_mode = #tpu.pipeline_mode<synchronous>, transform_indices = @transform_8, window_bounds = array<i64: 192, 1>}, {pipeline_mode = #tpu.pipeline_mode<synchronous>, transform_indices = @transform_9, window_bounds = array<i64: 32, 192>}, {pipeline_mode = #tpu.pipeline_mode<synchronous>, transform_indices = @transform_10, window_bounds = array<i64: 32, 1>}, {pipeline_mode = #tpu.pipeline_mode<synchronous>, transform_indices = @transform_11, window_bounds = array<i64: 1, 32>}, {pipeline_mode = #tpu.pipeline_mode<synchronous>, transform_indices = @transform_12, window_bounds = array<i64: 1, 1>}, {transform_indices = @transform_13, window_bounds = array<i64: 1, 1, 128>}]} {
    %c0 = arith.constant 0 : index
    %c0_0 = arith.constant 0 : index
    %0 = vector.load %arg1[%c0, %c0_0] : memref<12x128xf32, #tpu.memory_space<vmem>>, vector<12x128xf32>
    %c0_1 = arith.constant 0 : index
    %c0_2 = arith.constant 0 : index
    %1 = vector.load %arg2[%c0_1, %c0_2] : memref<192x12xbf16, #tpu.memory_space<vmem>>, vector<192x12xbf16>
    %2 = arith.truncf %0 : vector<12x128xf32> to vector<12x128xbf16>
    %cst = arith.constant dense<0.000000e+00> : vector<192x128xf32>
    %3 = tpu.matmul %1, %2, %cst {dimension_numbers = #tpu.dot_dimension_numbers<[1], [0], [0], [1], [0, 0, 1, 1], [], []>} : vector<192x12xbf16>, vector<12x128xbf16>, vector<192x128xf32> -> vector<192x128xf32>
    %c0_3 = arith.constant 0 : index
    %c0_4 = arith.constant 0 : index
    %4 = vector.load %arg3[%c0_3, %c0_4] : memref<192x1xf32, #tpu.memory_space<vmem>>, vector<192x1xf32>
    %5 = vector.broadcast %4 : vector<192x1xf32> to vector<192x128xf32>
    %6 = arith.addf %3, %5 : vector<192x128xf32>
    %cst_5 = arith.constant 0.000000e+00 : f32
    %7 = vector.broadcast %cst_5 : f32 to vector<192x128xf32>
    %8 = arith.maximumf %6, %7 : vector<192x128xf32>
    %c0_6 = arith.constant 0 : index
    %c0_7 = arith.constant 0 : index
    %9 = vector.load %arg4[%c0_6, %c0_7] : memref<384x192xbf16, #tpu.memory_space<vmem>>, vector<384x192xbf16>
    %10 = arith.truncf %8 : vector<192x128xf32> to vector<192x128xbf16>
    %cst_8 = arith.constant dense<0.000000e+00> : vector<384x128xf32>
    %11 = tpu.matmul %9, %10, %cst_8 {dimension_numbers = #tpu.dot_dimension_numbers<[1], [0], [0], [1], [0, 0, 1, 1], [], []>} : vector<384x192xbf16>, vector<192x128xbf16>, vector<384x128xf32> -> vector<384x128xf32>
    %c0_9 = arith.constant 0 : index
    %c0_10 = arith.constant 0 : index
    %12 = vector.load %arg5[%c0_9, %c0_10] : memref<384x1xf32, #tpu.memory_space<vmem>>, vector<384x1xf32>
    %13 = vector.broadcast %12 : vector<384x1xf32> to vector<384x128xf32>
    %14 = arith.addf %11, %13 : vector<384x128xf32>
    %cst_11 = arith.constant 0.000000e+00 : f32
    %15 = vector.broadcast %cst_11 : f32 to vector<384x128xf32>
    %16 = arith.maximumf %14, %15 : vector<384x128xf32>
    %17 = vector.shape_cast %16 : vector<384x128xf32> to vector<6x2x32x128xf32>
    %cst_12 = arith.constant dense<0xFF800000> : vector<6x32x128xf32>
    %18 = vector.multi_reduction <maximumf>, %17, %cst_12 [1] : vector<6x2x32x128xf32> to vector<6x32x128xf32>
    %19 = vector.shape_cast %18 : vector<6x32x128xf32> to vector<192x128xf32>
    %c0_13 = arith.constant 0 : index
    %c0_14 = arith.constant 0 : index
    %20 = vector.load %arg6[%c0_13, %c0_14] : memref<384x192xbf16, #tpu.memory_space<vmem>>, vector<384x192xbf16>
    %21 = arith.truncf %19 : vector<192x128xf32> to vector<192x128xbf16>
    %cst_15 = arith.constant dense<0.000000e+00> : vector<384x128xf32>
    %22 = tpu.matmul %20, %21, %cst_15 {dimension_numbers = #tpu.dot_dimension_numbers<[1], [0], [0], [1], [0, 0, 1, 1], [], []>} : vector<384x192xbf16>, vector<192x128xbf16>, vector<384x128xf32> -> vector<384x128xf32>
    %c0_16 = arith.constant 0 : index
    %c0_17 = arith.constant 0 : index
    %23 = vector.load %arg7[%c0_16, %c0_17] : memref<384x1xf32, #tpu.memory_space<vmem>>, vector<384x1xf32>
    %24 = vector.broadcast %23 : vector<384x1xf32> to vector<384x128xf32>
    %25 = arith.addf %22, %24 : vector<384x128xf32>
    %cst_18 = arith.constant 0.000000e+00 : f32
    %26 = vector.broadcast %cst_18 : f32 to vector<384x128xf32>
    %27 = arith.maximumf %25, %26 : vector<384x128xf32>
    %28 = vector.shape_cast %27 : vector<384x128xf32> to vector<3x2x64x128xf32>
    %cst_19 = arith.constant dense<0xFF800000> : vector<3x64x128xf32>
    %29 = vector.multi_reduction <maximumf>, %28, %cst_19 [1] : vector<3x2x64x128xf32> to vector<3x64x128xf32>
    %30 = vector.shape_cast %29 : vector<3x64x128xf32> to vector<192x128xf32>
    %c0_20 = arith.constant 0 : index
    %c0_21 = arith.constant 0 : index
    %31 = vector.load %arg8[%c0_20, %c0_21] : memref<192x192xbf16, #tpu.memory_space<vmem>>, vector<192x192xbf16>
    %32 = arith.truncf %30 : vector<192x128xf32> to vector<192x128xbf16>
    %cst_22 = arith.constant dense<0.000000e+00> : vector<192x128xf32>
    %33 = tpu.matmul %31, %32, %cst_22 {dimension_numbers = #tpu.dot_dimension_numbers<[1], [0], [0], [1], [0, 0, 1, 1], [], []>} : vector<192x192xbf16>, vector<192x128xbf16>, vector<192x128xf32> -> vector<192x128xf32>
    %c0_23 = arith.constant 0 : index
    %c0_24 = arith.constant 0 : index
    %34 = vector.load %arg9[%c0_23, %c0_24] : memref<192x1xf32, #tpu.memory_space<vmem>>, vector<192x1xf32>
    %35 = vector.broadcast %34 : vector<192x1xf32> to vector<192x128xf32>
    %36 = arith.addf %33, %35 : vector<192x128xf32>
    %cst_25 = arith.constant 0.000000e+00 : f32
    %37 = vector.broadcast %cst_25 : f32 to vector<192x128xf32>
    %38 = arith.maximumf %36, %37 : vector<192x128xf32>
    %c0_26 = arith.constant 0 : index
    %c0_27 = arith.constant 0 : index
    %39 = vector.load %arg10[%c0_26, %c0_27] : memref<32x192xbf16, #tpu.memory_space<vmem>>, vector<32x192xbf16>
    %40 = arith.truncf %38 : vector<192x128xf32> to vector<192x128xbf16>
    %cst_28 = arith.constant dense<0.000000e+00> : vector<32x128xf32>
    %41 = tpu.matmul %39, %40, %cst_28 {dimension_numbers = #tpu.dot_dimension_numbers<[1], [0], [0], [1], [0, 0, 1, 1], [], []>} : vector<32x192xbf16>, vector<192x128xbf16>, vector<32x128xf32> -> vector<32x128xf32>
    %c0_29 = arith.constant 0 : index
    %c0_30 = arith.constant 0 : index
    %42 = vector.load %arg11[%c0_29, %c0_30] : memref<32x1xf32, #tpu.memory_space<vmem>>, vector<32x1xf32>
    %43 = vector.broadcast %42 : vector<32x1xf32> to vector<32x128xf32>
    %44 = arith.addf %41, %43 : vector<32x128xf32>
    %cst_31 = arith.constant 0.000000e+00 : f32
    %45 = vector.broadcast %cst_31 : f32 to vector<32x128xf32>
    %46 = arith.maximumf %44, %45 : vector<32x128xf32>
    %c0_32 = arith.constant 0 : index
    %c0_33 = arith.constant 0 : index
    %47 = vector.load %arg12[%c0_32, %c0_33] : memref<1x32xbf16, #tpu.memory_space<vmem>>, vector<1x32xbf16>
    %48 = arith.truncf %46 : vector<32x128xf32> to vector<32x128xbf16>
    %cst_34 = arith.constant dense<0.000000e+00> : vector<1x128xf32>
    %49 = tpu.matmul %47, %48, %cst_34 {dimension_numbers = #tpu.dot_dimension_numbers<[1], [0], [0], [1], [0, 0, 1, 1], [], []>} : vector<1x32xbf16>, vector<32x128xbf16>, vector<1x128xf32> -> vector<1x128xf32>
    %c0_35 = arith.constant 0 : index
    %c0_36 = arith.constant 0 : index
    %50 = vector.load %arg13[%c0_35, %c0_36] : memref<1x1xf32, #tpu.memory_space<vmem>>, vector<1x1xf32>
    %51 = vector.broadcast %50 : vector<1x1xf32> to vector<1x128xf32>
    %52 = arith.addf %49, %51 : vector<1x128xf32>
    %53 = vector.shape_cast %52 : vector<1x128xf32> to vector<1x1x128xf32>
    %c0_37 = arith.constant 0 : index
    %c0_38 = arith.constant 0 : index
    %c0_39 = arith.constant 0 : index
    %54 = vector.load %arg14[%c0_37, %c0_38, %c0_39] : memref<1x1x128xf32, #tpu.memory_space<vmem>>, vector<1x1x128xf32>
    tpu.vector_store %arg14[%c0_37, %c0_38, %c0_39], %53 {strides = array<i32>} : memref<1x1x128xf32, #tpu.memory_space<vmem>>, vector<1x1x128xf32>,
    return
  }
  func.func @transform_0(%arg0: i32) -> (i32, i32) {
    %c0_i32 = arith.constant 0 : i32
    %c0_i32_0 = arith.constant 0 : i32
    return %c0_i32, %arg0 : i32, i32
  }
  func.func @transform_1(%arg0: i32) -> (i32, i32) {
    %c0_i32 = arith.constant 0 : i32
    %c0_i32_0 = arith.constant 0 : i32
    %c0_i32_1 = arith.constant 0 : i32
    return %c0_i32, %c0_i32_0 : i32, i32
  }
  func.func @transform_2(%arg0: i32) -> (i32, i32) {
    %c0_i32 = arith.constant 0 : i32
    %c0_i32_0 = arith.constant 0 : i32
    %c0_i32_1 = arith.constant 0 : i32
    return %c0_i32, %c0_i32_0 : i32, i32
  }
  func.func @transform_3(%arg0: i32) -> (i32, i32) {
    %c0_i32 = arith.constant 0 : i32
    %c0_i32_0 = arith.constant 0 : i32
    %c0_i32_1 = arith.constant 0 : i32
    return %c0_i32, %c0_i32_0 : i32, i32
  }
  func.func @transform_4(%arg0: i32) -> (i32, i32) {
    %c0_i32 = arith.constant 0 : i32
    %c0_i32_0 = arith.constant 0 : i32
    %c0_i32_1 = arith.constant 0 : i32
    return %c0_i32, %c0_i32_0 : i32, i32
  }
  func.func @transform_5(%arg0: i32) -> (i32, i32) {
    %c0_i32 = arith.constant 0 : i32
    %c0_i32_0 = arith.constant 0 : i32
    %c0_i32_1 = arith.constant 0 : i32
    return %c0_i32, %c0_i32_0 : i32, i32
  }
  func.func @transform_6(%arg0: i32) -> (i32, i32) {
    %c0_i32 = arith.constant 0 : i32
    %c0_i32_0 = arith.constant 0 : i32
    %c0_i32_1 = arith.constant 0 : i32
    return %c0_i32, %c0_i32_0 : i32, i32
  }
  func.func @transform_7(%arg0: i32) -> (i32, i32) {
    %c0_i32 = arith.constant 0 : i32
    %c0_i32_0 = arith.constant 0 : i32
    %c0_i32_1 = arith.constant 0 : i32
    return %c0_i32, %c0_i32_0 : i32, i32
  }
  func.func @transform_8(%arg0: i32) -> (i32, i32) {
    %c0_i32 = arith.constant 0 : i32
    %c0_i32_0 = arith.constant 0 : i32
    %c0_i32_1 = arith.constant 0 : i32
    return %c0_i32, %c0_i32_0 : i32, i32
  }
  func.func @transform_9(%arg0: i32) -> (i32, i32) {
    %c0_i32 = arith.constant 0 : i32
    %c0_i32_0 = arith.constant 0 : i32
    %c0_i32_1 = arith.constant 0 : i32
    return %c0_i32, %c0_i32_0 : i32, i32
  }
  func.func @transform_10(%arg0: i32) -> (i32, i32) {
    %c0_i32 = arith.constant 0 : i32
    %c0_i32_0 = arith.constant 0 : i32
    %c0_i32_1 = arith.constant 0 : i32
    return %c0_i32, %c0_i32_0 : i32, i32
  }
  func.func @transform_11(%arg0: i32) -> (i32, i32) {
    %c0_i32 = arith.constant 0 : i32
    %c0_i32_0 = arith.constant 0 : i32
    %c0_i32_1 = arith.constant 0 : i32
    return %c0_i32, %c0_i32_0 : i32, i32
  }
  func.func @transform_12(%arg0: i32) -> (i32, i32) {
    %c0_i32 = arith.constant 0 : i32
    %c0_i32_0 = arith.constant 0 : i32
    %c0_i32_1 = arith.constant 0 : i32
    return %c0_i32, %c0_i32_0 : i32, i32
  }
  func.func @transform_13(%arg0: i32) -> (i32, i32, i32) {
    %c0_i32 = arith.constant 0 : i32
    %c0_i32_0 = arith.constant 0 : i32
    %c0_i32_1 = arith.constant 0 : i32
    return %arg0, %c0_i32, %c0_i32_0 : i32, i32, i32
  }
}

</mosaic_0001>

<bundles_post_ra>
// kernel: tpu_custom_call.1
= control target key start
LH: loop header
LB: loop body
LE: loop exit
PB: predicated region body
PF: predicated region fallthrough
CT: control target
= control target key end

     0   :  { %s5027_s0 = inlined_call_operand.vmem [shape: f32[12,128], index: 0, kind: input, shape index: {}]   ;;  %s5028_s1 = inlined_call_operand.vmem [shape: bf16[192,12], index: 1, kind: input, shape index: {}]   ;;  %s5029_s2 = inlined_call_operand.vmem [shape: f32[192,1], index: 2, kind: input, shape index: {}]   ;;  %s5030_s3 = inlined_call_operand.vmem [shape: bf16[384,192], index: 3, kind: input, shape index: {}]   ;;  %s5031_s4 = inlined_call_operand.vmem [shape: f32[384,1], index: 4, kind: input, shape index: {}]   ;;  %s5032_s5 = inlined_call_operand.vmem [shape: bf16[384,192], index: 5, kind: input, shape index: {}]   ;;  %s5033_s6 = inlined_call_operand.vmem [shape: f32[384,1], index: 6, kind: input, shape index: {}]   ;;  %s5034_s7 = inlined_call_operand.vmem [shape: bf16[192,192], index: 7, kind: input, shape index: {}]   ;;  %s5035_s8 = inlined_call_operand.vmem [shape: f32[192,1], index: 8, kind: input, shape index: {}]   ;;  %s5036_s9 = inlined_call_operand.vmem [shape: bf16[32,192], index: 9, kind: input, shape index: {}]   ;;  %s5037_s10 = inlined_call_operand.vmem [shape: f32[32,1], index: 10, kind: input, shape index: {}]   ;;  %s5038_s11 = inlined_call_operand.vmem [shape: bf16[1,32], index: 11, kind: input, shape index: {}]   ;;  %s5039_s12 = inlined_call_operand.<no memory space> [shape: f32[1,1], index: 12, kind: input, shape index: {}]   ;;  %s5040_s13 = inlined_call_operand.hbm [shape: f32[1,1,128], index: 13, kind: output, shape index: {}]  }
   0x1   :  { %v18_v0 = vstv %s5039_s12 }
   0x2   :  { %19 = vst [vmem:[#allocation2] sm:$0x1] %v18_v0 }
   0x3   :  { %v89_v1 = vld [vmem:[%s5029_s2 + $0x70] sm:$0xff]  ;;  %v87_v2 = vld [vmem:[%s5029_s2 + $0x60] sm:$0xff]  ;;  %v3494_v4 = vmov 0   ;;  %v49_v5 = vld [vmem:[%s5027_s0 + $0x8] sm:$0xf]  ;;  %vm316_vm0 = vcmask 1045504  }
   0x4   :  { %v48_v3 = vld [vmem:[%s5027_s0] sm:$0xff]  ;;  %3273 = vset.pattern.permute.xlu1 %v3494_v4  ;;  %3272 = vset.pattern.permute.xlu0 %v3494_v4  ;;  %v90_v6 = vld [vmem:[%s5029_s2 + $0x78] sm:$0xff]  ;;  %vm279_vm1 = vcmask 97280   ;;  %v88_v9 = vld [vmem:[%s5029_s2 + $0x68] sm:$0xff] }
   0x5   :  { %171 = vperm.xlu0 %3272, %v89_v1   ;;  %161 = vperm.xlu1 %3273, %v87_v2   ;;  %v74_v7 = vpack.c.bf16 %v49_v5, %v48_v3  ;;  %v3274_v8 = vld [vmem:[%s5028_s1] sm:$0xff]   ;;  %v3275_v11 = vld [vmem:[%s5028_s1 + $0x8] sm:$0xff]   ;;  %v3276_v12 = vld [vmem:[%s5028_s1 + $0x10] sm:$0xff]  }
   0x6   :  { %1110 = vmatprep.subr.bf16.mxu1 %v3494_v4  ;;  %3235 = vmatprep.mubr.msk.bf16.mxu0 %vm279_vm1, %v3274_v8  ;;  %v86_v13 = vld [vmem:[%s5029_s2 + $0x58] sm:$0xff]  ;;  %v85_v14 = vld [vmem:[%s5029_s2 + $0x50] sm:$0xff]  ;;  %v84_v15 = vld [vmem:[%s5029_s2 + $0x48] sm:$0xff] }
   0x7   :  { %3267 = vmatprep.subr.msk.bf16.mxu0 %vm316_vm0, %v74_v7  ;;  %v318_v10 = vsel %vm316_vm0, %v74_v7, 0  ;;  %v83_v16 = vld [vmem:[%s5029_s2 + $0x40] sm:$0xff]  ;;  %v3277_v17 = vld [vmem:[%s5028_s1 + $0x18] sm:$0xff]   ;;  %v81_v20 = vld [vmem:[%s5029_s2 + $0x30] sm:$0xff] }
   0x8   :  { %3234 = vmatpush3.bf16.msra.mxu0 %v318_v10  ;;  %v3278_v18 = vld [vmem:[%s5028_s1 + $0x20] sm:$0xff]   ;;  %v82_v19 = vld [vmem:[%s5029_s2 + $0x38] sm:$0xff]  ;;  %v80_v21 = vld [vmem:[%s5029_s2 + $0x28] sm:$0xff] }
   0x9   :  { %176 = vperm.xlu0 %3272, %v90_v6   ;;  %166 = vperm.xlu1 %3273, %v88_v9   ;;  %v79_v22 = vld [vmem:[%s5029_s2 + $0x20] sm:$0xff]  ;;  %v3279_v23 = vld [vmem:[%s5028_s1 + $0x28] sm:$0xff]   ;;  %v3280_v24 = vld [vmem:[%s5028_s1 + $0x30] sm:$0xff]  }
   0xa   :  { %2043 = vmatprep.subr.bf16.mxu0 %v3494_v4  ;;  %v78_v25 = vld [vmem:[%s5029_s2 + $0x18] sm:$0xff]  ;;  %v77_v26 = vld [vmem:[%s5029_s2 + $0x10] sm:$0xff]  ;;  %v76_v27 = vld [vmem:[%s5029_s2 + $0x8] sm:$0xff] }
   0xb   :  { %3236 = vmatmul.mubr.msk.bf16.vlgmr.msra.gmra.mxu0 %vm279_vm1, %v3275_v11  ;;  %v75_v28 = vld [vmem:[%s5029_s2] sm:$0xff]  ;;  %v3281_v29 = vld [vmem:[%s5028_s1 + $0x38] sm:$0xff]   ;;  %v97_v32 = vld [vmem:[%s5029_s2 + $0xb0] sm:$0xff] }
   0xc   :  { %3239 = vmatprep.mubr.msk.bf16.mxu0 %vm279_vm1, %v3276_v12  ;;  %v3282_v30 = vld [vmem:[%s5028_s1 + $0x40] sm:$0xff]   ;;  %v98_v31 = vld [vmem:[%s5029_s2 + $0xb8] sm:$0xff]  ;;  %v96_v33 = vld [vmem:[%s5029_s2 + $0xa8] sm:$0xff] }
   0xd   :  { %156 = vperm.xlu1 %3273, %v86_v13   ;;  %151 = vperm.xlu0 %3272, %v85_v14   ;;  %v95_v34 = vld [vmem:[%s5029_s2 + $0xa0] sm:$0xff]  ;;  %v3283_v35 = vld [vmem:[%s5028_s1 + $0x48] sm:$0xff]   ;;  %v3284_v36 = vld [vmem:[%s5028_s1 + $0x50] sm:$0xff]  }
   0xe   :  { %v94_v37 = vld [vmem:[%s5029_s2 + $0x98] sm:$0xff]  ;;  %v93_v38 = vld [vmem:[%s5029_s2 + $0x90] sm:$0xff]  ;;  %v92_v39 = vld [vmem:[%s5029_s2 + $0x88] sm:$0xff] }
   0xf   :  { %v91_v40 = vld [vmem:[%s5029_s2 + $0x80] sm:$0xff]  ;;  %v3285_v41 = vld [vmem:[%s5028_s1 + $0x58] sm:$0xff]   ;;  %v559_v43 = vld [vmem:[%s5031_s4 + $0xd0] sm:$0xff] }
  0x10   :  { %v560_v42 = vld [vmem:[%s5031_s4 + $0xd8] sm:$0xff]  ;;  %v563_v45 = vld [vmem:[%s5031_s4 + $0xf0] sm:$0xff]  ;;  %v558_v46 = vld [vmem:[%s5031_s4 + $0xc8] sm:$0xff] }
  0x11   :  { %146 = vperm.xlu1 %3273, %v84_v15   ;;  %141 = vperm.xlu0 %3272, %v83_v16   ;;  %v564_v44 = vld [vmem:[%s5031_s4 + $0xf8] sm:$0xff]  ;;  %v557_v47 = vld [vmem:[%s5031_s4 + $0xc0] sm:$0xff]  ;;  %v562_v48 = vld [vmem:[%s5031_s4 + $0xe8] sm:$0xff] }
  0x12   :  { %v561_v49 = vld [vmem:[%s5031_s4 + $0xe0] sm:$0xff]  ;;  %v552_v50 = vld [vmem:[%s5031_s4 + $0x98] sm:$0xff]  ;;  %v551_v51 = vld [vmem:[%s5031_s4 + $0x90] sm:$0xff] }
  0x13   :  { %3240 = vmatmul.mubr.msk.bf16.gmra.mxu0 %vm279_vm1, %v3277_v17  ;;  %v556_v52 = vld [vmem:[%s5031_s4 + $0xb8] sm:$0xff]  ;;  %v555_v53 = vld [vmem:[%s5031_s4 + $0xb0] sm:$0xff]  ;;  %v550_v54 = vld [vmem:[%s5031_s4 + $0x88] sm:$0xff] }
  0x14   :  { %3243 = vmatprep.mubr.msk.bf16.mxu0 %vm279_vm1, %v3278_v18  ;;  %v549_v55 = vld [vmem:[%s5031_s4 + $0x80] sm:$0xff]  ;;  %v554_v56 = vld [vmem:[%s5031_s4 + $0xa8] sm:$0xff]  ;;  %v544_v58 = vld [vmem:[%s5031_s4 + $0x58] sm:$0xff] }
  0x15   :  { %136 = vperm.xlu1 %3273, %v82_v19   ;;  %131 = vperm.xlu0 %3272, %v81_v20   ;;  %v553_v57 = vld [vmem:[%s5031_s4 + $0xa0] sm:$0xff]  ;;  %v543_v59 = vld [vmem:[%s5031_s4 + $0x50] sm:$0xff]  ;;  %v548_v60 = vld [vmem:[%s5031_s4 + $0x78] sm:$0xff] }
  0x16   :  { %v547_v61 = vld [vmem:[%s5031_s4 + $0x70] sm:$0xff]  ;;  %v542_v62 = vld [vmem:[%s5031_s4 + $0x48] sm:$0xff]  ;;  %v541_v63 = vld [vmem:[%s5031_s4 + $0x40] sm:$0xff] }
  0x19   :  { %126 = vperm.xlu1 %3273, %v80_v21   ;;  %121 = vperm.xlu0 %3272, %v79_v22  }
  0x1b   :  { %3244 = vmatmul.mubr.msk.bf16.gmra.mxu0 %vm279_vm1, %v3279_v23 }
  0x1c   :  { %3247 = vmatprep.mubr.msk.bf16.mxu0 %vm279_vm1, %v3280_v24 }
  0x1d   :  { %116 = vperm.xlu1 %3273, %v78_v25   ;;  %111 = vperm.xlu0 %3272, %v77_v26  }
  0x21   :  { %106 = vperm.xlu1 %3273, %v76_v27   ;;  %101 = vperm.xlu0 %3272, %v75_v28  }
  0x23   :  { %3248 = vmatmul.mubr.msk.bf16.gmra.mxu0 %vm279_vm1, %v3281_v29 }
  0x24   :  { %3251 = vmatprep.mubr.msk.bf16.mxu0 %vm279_vm1, %v3282_v30 }
  0x25   :  { %216 = vperm.xlu1 %3273, %v98_v31   ;;  %211 = vperm.xlu0 %3272, %v97_v32  }
  0x29   :  { %206 = vperm.xlu1 %3273, %v96_v33   ;;  %201 = vperm.xlu0 %3272, %v95_v34  }
  0x2b   :  { %3252 = vmatmul.mubr.msk.bf16.gmra.mxu0 %vm279_vm1, %v3283_v35 }
  0x2c   :  { %3255 = vmatprep.mubr.msk.bf16.mxu0 %vm279_vm1, %v3284_v36 }
  0x2d   :  { %196 = vperm.xlu1 %3273, %v94_v37   ;;  %191 = vperm.xlu0 %3272, %v93_v38  }
  0x31   :  { %186 = vperm.xlu1 %3273, %v92_v39   ;;  %181 = vperm.xlu0 %3272, %v91_v40  }
  0x33   :  { %3256 = vmatmul.mubr.msk.bf16.gmra.mxu0 %vm279_vm1, %v3285_v41 }
  0x35   :  { %718 = vperm.xlu1 %3273, %v560_v42   ;;  %713 = vperm.xlu0 %3272, %v559_v43  }
  0x39   :  { %738 = vperm.xlu1 %3273, %v564_v44   ;;  %733 = vperm.xlu0 %3272, %v563_v45  }
  0x3d   :  { %708 = vperm.xlu1 %3273, %v558_v46   ;;  %703 = vperm.xlu0 %3272, %v557_v47  }
  0x41   :  { %728 = vperm.xlu1 %3273, %v562_v48   ;;  %723 = vperm.xlu0 %3272, %v561_v49  }
  0x45   :  { %678 = vperm.xlu1 %3273, %v552_v50   ;;  %673 = vperm.xlu0 %3272, %v551_v51  }
  0x49   :  { %698 = vperm.xlu1 %3273, %v556_v52   ;;  %693 = vperm.xlu0 %3272, %v555_v53  }
  0x4d   :  { %668 = vperm.xlu1 %3273, %v550_v54   ;;  %663 = vperm.xlu0 %3272, %v549_v55  }
  0x51   :  { %688 = vperm.xlu1 %3273, %v554_v56   ;;  %683 = vperm.xlu0 %3272, %v553_v57  }
  0x55   :  { %638 = vperm.xlu1 %3273, %v544_v58   ;;  %633 = vperm.xlu0 %3272, %v543_v59  }
  0x59   :  { %658 = vperm.xlu1 %3273, %v548_v60   ;;  %653 = vperm.xlu0 %3272, %v547_v61  }
  0x5d   :  { %628 = vperm.xlu1 %3273, %v542_v62   ;;  %623 = vperm.xlu0 %3272, %v541_v63  }
  0x5e   :  { %20 = vsyncpa [#allocation4], 0  ;;  %v546_v0 = vld [vmem:[%s5031_s4 + $0x68] sm:$0xff]  ;;  %v545_v1 = vld [vmem:[%s5031_s4 + $0x60] sm:$0xff]  ;;  %vm1037_vm2 = vcmask 523264   ;;  %vm3496_vm3 = vmmov 0  }
  0x5f   :  { %v536_v2 = vld [vmem:[%s5031_s4 + $0x18] sm:$0xff]  ;;  %v535_v3 = vld [vmem:[%s5031_s4 + $0x10] sm:$0xff]  ;;  %v534_v7 = vld [vmem:[%s5031_s4 + $0x8] sm:$0xff]  ;;  %vm2947_vm4 = vcmask 261120  }
  0x60   :  { %v540_v5 = vld [vmem:[%s5031_s4 + $0x38] sm:$0xff]  ;;  %v539_v6 = vld [vmem:[%s5031_s4 + $0x30] sm:$0xff]  ;;  %v533_v8 = vld [vmem:[%s5031_s4] sm:$0xff] }
  0x61   :  { %648 = vperm.xlu1 %3273, %v546_v0   ;;  %643 = vperm.xlu0 %3272, %v545_v1   ;;  %v538_v9 = vld [vmem:[%s5031_s4 + $0x28] sm:$0xff]  ;;  %v537_v10 = vld [vmem:[%s5031_s4 + $0x20] sm:$0xff]  ;;  %v576_v11 = vld [vmem:[%s5031_s4 + $0x158] sm:$0xff] }
  0x62   :  { %v575_v12 = vld [vmem:[%s5031_s4 + $0x150] sm:$0xff]  ;;  %v580_v13 = vld [vmem:[%s5031_s4 + $0x178] sm:$0xff]  ;;  %v574_v15 = vld [vmem:[%s5031_s4 + $0x148] sm:$0xff] }
  0x63   :  { %v579_v14 = vld [vmem:[%s5031_s4 + $0x170] sm:$0xff]  ;;  %v573_v16 = vld [vmem:[%s5031_s4 + $0x140] sm:$0xff]  ;;  %v578_v17 = vld [vmem:[%s5031_s4 + $0x168] sm:$0xff] }
  0x64   :  { %v577_v18 = vld [vmem:[%s5031_s4 + $0x160] sm:$0xff]  ;;  %v568_v19 = vld [vmem:[%s5031_s4 + $0x118] sm:$0xff]  ;;  %v567_v20 = vld [vmem:[%s5031_s4 + $0x110] sm:$0xff] }
  0x65   :  { %598 = vperm.xlu1 %3273, %v536_v2   ;;  %593 = vperm.xlu0 %3272, %v535_v3   ;;  %v572_v21 = vld [vmem:[%s5031_s4 + $0x138] sm:$0xff]  ;;  %v571_v22 = vld [vmem:[%s5031_s4 + $0x130] sm:$0xff]  ;;  %v566_v23 = vld [vmem:[%s5031_s4 + $0x108] sm:$0xff] }
  0x66   :  { %v565_v24 = vld [vmem:[%s5031_s4 + $0x100] sm:$0xff]  ;;  %v570_v25 = vld [vmem:[%s5031_s4 + $0x128] sm:$0xff]  ;;  %v1490_v27 = vld [vmem:[%s5033_s6 + $0xb8] sm:$0xff] }
  0x67   :  { %v569_v26 = vld [vmem:[%s5031_s4 + $0x120] sm:$0xff]  ;;  %v1489_v28 = vld [vmem:[%s5033_s6 + $0xb0] sm:$0xff]  ;;  %v1498_v29 = vld [vmem:[%s5033_s6 + $0xf8] sm:$0xff] }
  0x68   :  { %v1497_v30 = vld [vmem:[%s5033_s6 + $0xf0] sm:$0xff]  ;;  %v1488_v33 = vld [vmem:[%s5033_s6 + $0xa8] sm:$0xff]  ;;  %v1487_v34 = vld [vmem:[%s5033_s6 + $0xa0] sm:$0xff] }
  0x69   :  { %618 = vperm.xlu1 %3273, %v540_v5   ;;  %613 = vperm.xlu0 %3272, %v539_v6   ;;  %v3288_v35 = vld [vmem:[%s5030_s3 + $0x4] ss:$8 sps:$4 sm:$0xff]   ;;  %v1486_v40 = vld [vmem:[%s5033_s6 + $0x98] sm:$0xff]  ;;  %v1485_v41 = vld [vmem:[%s5033_s6 + $0x90] sm:$0xff] }
  0x6a   :  { %3078 = vmatprep.mubr.msk.bf16.mxu1 %vm1037_vm2, %v3288_v35  ;;  %v1496_v37 = vld [vmem:[%s5033_s6 + $0xe8] sm:$0xff]  ;;  %v1495_v38 = vld [vmem:[%s5033_s6 + $0xe0] sm:$0xff]  ;;  %v1494_v44 = vld [vmem:[%s5033_s6 + $0xd8] sm:$0xff] }
  0x6b   :  { %v1493_v45 = vld [vmem:[%s5033_s6 + $0xd0] sm:$0xff]  ;;  %v1484_v47 = vld [vmem:[%s5033_s6 + $0x88] sm:$0xff]  ;;  %v1483_v48 = vld [vmem:[%s5033_s6 + $0x80] sm:$0xff] }
  0x6c   :  { %v1492_v50 = vld [vmem:[%s5033_s6 + $0xc8] sm:$0xff]  ;;  %v1491_v51 = vld [vmem:[%s5033_s6 + $0xc0] sm:$0xff]  ;;  %v1474_v54 = vld [vmem:[%s5033_s6 + $0x38] sm:$0xff] }
  0x6d   :  { %588 = vperm.xlu1 %3273, %v534_v7   ;;  %583 = vperm.xlu0 %3272, %v533_v8   ;;  %v1473_v55 = vld [vmem:[%s5033_s6 + $0x30] sm:$0xff]  ;;  %v1482_v57 = vld [vmem:[%s5033_s6 + $0x78] sm:$0xff]  ;;  %v1472_v60 = vld [vmem:[%s5033_s6 + $0x28] sm:$0xff] }
  0x6e   :  { %v1481_v58 = vld [vmem:[%s5033_s6 + $0x70] sm:$0xff]  ;;  %v1471_v61 = vld [vmem:[%s5033_s6 + $0x20] sm:$0xff]  ;;  %v1480_v0 = vld [vmem:[%s5033_s6 + $0x68] sm:$0xff] }
  0x6f   :  { %v1479_v1 = vld [vmem:[%s5033_s6 + $0x60] sm:$0xff]  ;;  %v1470_v3 = vld [vmem:[%s5033_s6 + $0x18] sm:$0xff]  ;;  %v1469_v5 = vld [vmem:[%s5033_s6 + $0x10] sm:$0xff] }
  0x70   :  { %v1478_v7 = vld [vmem:[%s5033_s6 + $0x58] sm:$0xff]  ;;  %v1477_v8 = vld [vmem:[%s5033_s6 + $0x50] sm:$0xff]  ;;  %v1503_v35 = vld [vmem:[%s5033_s6 + $0x120] sm:$0xff] }
  0x71   :  { %608 = vperm.xlu1 %3273, %v538_v9   ;;  %603 = vperm.xlu0 %3272, %v537_v10  }
  0x75   :  { %798 = vperm.xlu1 %3273, %v576_v11   ;;  %793 = vperm.xlu0 %3272, %v575_v12   ;;  %v1468_v11 = vld [vmem:[%s5033_s6 + $0x8] sm:$0xff]  ;;  %v1467_v12 = vld [vmem:[%s5033_s6] sm:$0xff] }
  0x79   :  { %818 = vperm.xlu1 %3273, %v580_v13   ;;  %813 = vperm.xlu0 %3272, %v579_v14  }
  0x7d   :  { %788 = vperm.xlu1 %3273, %v574_v15   ;;  %783 = vperm.xlu0 %3272, %v573_v16   ;;  %v1476_v16 = vld [vmem:[%s5033_s6 + $0x48] sm:$0xff] }
  0x80   :  { %v3857_v31 = vpop.permute.xlu0 %171  ;;  %v3859_v32 = vpop.permute.xlu1 %161 }
  0x81   :  { %808 = vperm.xlu1 %3273, %v578_v17   ;;  %803 = vperm.xlu0 %3272, %v577_v18   ;;  %v1475_v17 = vld [vmem:[%s5033_s6 + $0x40] sm:$0xff] }
  0x84   :  { %v3871_v36 = vpop.permute.xlu0 %176  ;;  %v3879_v39 = vpop.permute.xlu1 %166 }
  0x85   :  { %758 = vperm.xlu1 %3273, %v568_v19   ;;  %753 = vperm.xlu0 %3272, %v567_v20  }
  0x88   :  { %v3887_v42 = vpop.permute.xlu0 %151  ;;  %v3889_v43 = vpop.permute.xlu1 %156 }
  0x89   :  { %778 = vperm.xlu1 %3273, %v572_v21   ;;  %773 = vperm.xlu0 %3272, %v571_v22   ;;  %v1506_v21 = vld [vmem:[%s5033_s6 + $0x138] sm:$0xff]  ;;  %v1505_v22 = vld [vmem:[%s5033_s6 + $0x130] sm:$0xff] }
  0x8c   :  { %v3897_v46 = vpop.permute.xlu0 %141  ;;  %v3905_v49 = vpop.permute.xlu1 %146 }
  0x8d   :  { %748 = vperm.xlu1 %3273, %v566_v23   ;;  %743 = vperm.xlu0 %3272, %v565_v24  }
  0x90   :  { %v3913_v52 = vpop.permute.xlu0 %131  ;;  %v3915_v53 = vpop.permute.xlu1 %136 }
  0x91   :  { %768 = vperm.xlu1 %3273, %v570_v25   ;;  %763 = vperm.xlu0 %3272, %v569_v26  }
  0x94   :  { %v3923_v56 = vpop.permute.xlu0 %121  ;;  %v3931_v59 = vpop.permute.xlu1 %126 }
  0x95   :  { %1632 = vperm.xlu1 %3273, %v1490_v27   ;;  %1627 = vperm.xlu0 %3272, %v1489_v28   ;;  %v1514_v27 = vld [vmem:[%s5033_s6 + $0x178] sm:$0xff]  ;;  %v1513_v28 = vld [vmem:[%s5033_s6 + $0x170] sm:$0xff] }
  0x98   :  { %v3939_v62 = vpop.permute.xlu0 %111  ;;  %v3941_v63 = vpop.permute.xlu1 %116 }
  0x99   :  { %1672 = vperm.xlu1 %3273, %v1498_v29   ;;  %1667 = vperm.xlu0 %3272, %v1497_v30  }
  0x9c   :  { %v3949_v2 = vpop.permute.xlu0 %101  ;;  %v3957_v6 = vpop.permute.xlu1 %106 }
  0x9d   :  { %1622 = vperm.xlu1 %3273, %v1488_v33   ;;  %1617 = vperm.xlu0 %3272, %v1487_v34   ;;  %v1504_v34 = vld [vmem:[%s5033_s6 + $0x128] sm:$0xff] }
  0xa0   :  { %v3965_v9 = vpop.permute.xlu0 %211  ;;  %v3967_v10 = vpop.permute.xlu1 %216 }
  0xa1   :  { %1662 = vperm.xlu1 %3273, %v1496_v37   ;;  %1657 = vperm.xlu0 %3272, %v1495_v38  }
  0xa4   :  { %v3979_v15 = vpop.permute.xlu0 %201  ;;  %v3987_v18 = vpop.permute.xlu1 %206 }
  0xa5   :  { %1612 = vperm.xlu1 %3273, %v1486_v40   ;;  %1607 = vperm.xlu0 %3272, %v1485_v41   ;;  %v1512_v41 = vld [vmem:[%s5033_s6 + $0x168] sm:$0xff] }
  0xa8   :  { %v4001_v24 = vpop.permute.xlu0 %191  ;;  %v4003_v25 = vpop.permute.xlu1 %196 }
  0xa9   :  { %1652 = vperm.xlu1 %3273, %v1494_v44   ;;  %1647 = vperm.xlu0 %3272, %v1493_v45   ;;  %v1511_v44 = vld [vmem:[%s5033_s6 + $0x160] sm:$0xff] }
  0xac   :  { %v4017_v33 = vpop.permute.xlu0 %181  ;;  %v4025_v37 = vpop.permute.xlu1 %186 }
  0xad   :  { %1602 = vperm.xlu1 %3273, %v1484_v47   ;;  %1597 = vperm.xlu0 %3272, %v1483_v48  }
  0xb0   :  { %v4033_v47 = vpop.permute.xlu0 %713  ;;  %v4035_v48 = vpop.permute.xlu1 %718 }
  0xb1   :  { %1642 = vperm.xlu1 %3273, %v1492_v50   ;;  %1637 = vperm.xlu0 %3272, %v1491_v51   ;;  %v1502_v51 = vld [vmem:[%s5033_s6 + $0x118] sm:$0xff] }
  0xb5   :  { %1552 = vperm.xlu1 %3273, %v1474_v54   ;;  %1547 = vperm.xlu0 %3272, %v1473_v55   ;;  %v1501_v54 = vld [vmem:[%s5033_s6 + $0x110] sm:$0xff] }
  0xb9   :  { %1592 = vperm.xlu1 %3273, %v1482_v57   ;;  %1587 = vperm.xlu0 %3272, %v1481_v58   ;;  %v4043_v58 = vpop.permute.xlu0 %733 }
  0xbd   :  { %1542 = vperm.xlu1 %3273, %v1472_v60   ;;  %1537 = vperm.xlu0 %3272, %v1471_v61   ;;  %v1510_v61 = vld [vmem:[%s5033_s6 + $0x158] sm:$0xff] }
  0xc1   :  { %1582 = vperm.xlu1 %3273, %v1480_v0   ;;  %1577 = vperm.xlu0 %3272, %v1479_v1   ;;  %v1509_v0 = vld [vmem:[%s5033_s6 + $0x150] sm:$0xff]  ;;  %v4052_v1 = vpop.permute.xlu1 %738 }
  0xc5   :  { %1532 = vperm.xlu1 %3273, %v1470_v3   ;;  %1527 = vperm.xlu0 %3272, %v1469_v5  }
  0xc9   :  { %1572 = vperm.xlu1 %3273, %v1478_v7   ;;  %1567 = vperm.xlu0 %3272, %v1477_v8  }
  0xcb   :  { %v3975_v13 = vpop.f32.mrf.mxu0 }
  0xcd   :  { %v3977_v14 = vpop.f32.mrf.mxu0  ;;  %1522 = vperm.xlu1 %3273, %v1468_v11   ;;  %1517 = vperm.xlu0 %3272, %v1467_v12  }
  0xcf   :  { %v3989_v19 = vpop.f32.mrf.mxu0 }
  0xd1   :  { %v3991_v20 = vpop.f32.mrf.mxu0  ;;  %1562 = vperm.xlu1 %3273, %v1476_v16   ;;  %1557 = vperm.xlu0 %3272, %v1475_v17   ;;  %v1500_v16 = vld [vmem:[%s5033_s6 + $0x108] sm:$0xff]  ;;  %v1499_v17 = vld [vmem:[%s5033_s6 + $0x100] sm:$0xff] }
  0xd3   :  { %v3999_v23 = vpop.f32.mrf.mxu0 }
  0xd5   :  { %v4005_v26 = vpop.f32.mrf.mxu0  ;;  %1712 = vperm.xlu1 %3273, %v1506_v21   ;;  %1707 = vperm.xlu0 %3272, %v1505_v22  }
  0xd7   :  { %v4013_v29 = vpop.f32.mrf.mxu0 }
  0xd9   :  { %v4015_v30 = vpop.f32.mrf.mxu0  ;;  %1752 = vperm.xlu1 %3273, %v1514_v27   ;;  %1747 = vperm.xlu0 %3272, %v1513_v28  }
  0xdb   :  { %v3245_v38 = vpop.f32.mrf.mxu0 }
  0xdd   :  { %v386_v40 = vpop.f32.mrf.mxu0  ;;  %1702 = vperm.xlu1 %3273, %v1504_v34   ;;  %1697 = vperm.xlu0 %3272, %v1503_v35  }
  0xdf   :  { %v3246_v45 = vpop.f32.mrf.mxu0 }
  0xe0   :  { %v398_v22 = vadd.f32 %v3246_v45, %v3889_v43  ;;  %v1507_v43 = vld [vmem:[%s5033_s6 + $0x140] sm:$0xff] }
  0xe1   :  { %v389_v50 = vpop.f32.mrf.mxu0  ;;  %1742 = vperm.xlu1 %3273, %v1512_v41   ;;  %1737 = vperm.xlu0 %3272, %v1511_v44   ;;  %v1508_v41 = vld [vmem:[%s5033_s6 + $0x148] sm:$0xff] }
  0xe2   :  { %v460_v44 = vmax.f32 %v398_v22, 0.0  ;;  %v390_v45 = vadd.f32 %v389_v50, %v3905_v49  ;;  %v382_v50 = vadd.f32 %v4013_v29, %v3915_v53 }
  0xe3   :  { %v3249_v55 = vpop.f32.mrf.mxu0 }
  0xe4   :  { %v411_v60 = vadd.f32 %v3249_v55, %v3857_v31  ;;  %v387_v55 = vadd.f32 %v386_v40, %v3897_v46  ;;  %v379_v46 = vadd.f32 %v3999_v23, %v3913_v52  ;;  %v456_v29 = vmax.f32 %v382_v50, 0.0  ;;  %v2381_v50 = vld [vmem:[%s5035_s8 + $0x28] sm:$0xff] }
  0xe5   :  { %v402_v57 = vpop.f32.mrf.mxu0  ;;  %1692 = vperm.xlu1 %3273, %v1502_v51   ;;  %1687 = vperm.xlu0 %3272, %v1501_v54  }
  0xe6   :  { %v463_v8 = vmax.f32 %v411_v60, 0.0  ;;  %v403_v11 = vadd.f32 %v402_v57, %v3859_v32  ;;  %v4068_v32 = vpop.permute.xlu1 %708  ;;  %v2391_v57 = vld [vmem:[%s5035_s8 + $0x78] sm:$0xff]  ;;  %v2390_v60 = vld [vmem:[%s5035_s8 + $0x70] sm:$0xff]  ;;  %v457_v40 = vmax.f32 %v387_v55, 0.0 }
  0xe7   :  { %v3250_v3 = vpop.f32.mrf.mxu0 }
  0xe8   :  { %v414_v5 = vadd.f32 %v3250_v3, %v3871_v36  ;;  %v4065_v36 = vpop.permute.xlu0 %703  ;;  %v461_v35 = vmax.f32 %v403_v11, 0.0 }
  0xe9   :  { %v405_v7 = vpop.f32.mrf.mxu0  ;;  %1732 = vperm.xlu1 %3273, %v1510_v61   ;;  %1727 = vperm.xlu0 %3272, %v1509_v0   ;;  %v458_v0 = vmax.f32 %v390_v45, 0.0  ;;  %v2383_v45 = vld [vmem:[%s5035_s8 + $0x38] sm:$0xff] }
  0xea   :  { %v464_v31 = vmax.f32 %v414_v5, 0.0  ;;  %v406_v12 = vadd.f32 %v405_v7, %v3879_v39  ;;  %v395_v39 = vadd.f32 %v3245_v38, %v3887_v42  ;;  %v4092_v49 = vpop.permute.xlu1 %728  ;;  %v2389_v5 = vld [vmem:[%s5035_s8 + $0x68] sm:$0xff]  ;;  %v2388_v7 = vld [vmem:[%s5035_s8 + $0x60] sm:$0xff] }
  0xeb   :  { %v4063_v21 = vpop.f32.mrf.mxu0  ;;  %v525_v11 = vpack.c.bf16 %v458_v0, %v457_v40 }
  0xec   :  { %v462_v27 = vmax.f32 %v406_v12, 0.0  ;;  %v528_v28 = vpack.c.bf16 %v464_v31, %v463_v8  ;;  %v4083_v42 = vpop.permute.xlu0 %723  ;;  %v459_v38 = vmax.f32 %v395_v39, 0.0  ;;  %v374_v8 = vadd.f32 %v4015_v30, %v3931_v59  ;;  %v2385_v39 = vld [vmem:[%s5035_s8 + $0x48] sm:$0xff] }
  0xed   :  { %v4070_v34 = vpop.f32.mrf.mxu0  ;;  %1682 = vperm.xlu1 %3273, %v1500_v16   ;;  %1677 = vperm.xlu0 %3272, %v1499_v17   ;;  %v455_v31 = vmax.f32 %v379_v46, 0.0  ;;  %v371_v12 = vadd.f32 %v4005_v26, %v3923_v56  ;;  %v2387_v16 = vld [vmem:[%s5035_s8 + $0x58] sm:$0xff]  ;;  %v2386_v17 = vld [vmem:[%s5035_s8 + $0x50] sm:$0xff]  ;;  %v366_v59 = vadd.f32 %v3989_v19, %v3941_v63  ;;  %v363_v26 = vadd.f32 %v3975_v13, %v3939_v62  ;;  %v2384_v63 = vld [vmem:[%s5035_s8 + $0x40] sm:$0xff] }
  0xee   :  { %1111 = vmatpush1.bf16.msra.mxu1 %v528_v28  ;;  %v527_v51 = vpack.c.bf16 %v462_v27, %v461_v35  ;;  %v526_v61 = vpack.c.bf16 %v460_v44, %v459_v38  ;;  %v4112_v52 = vpop.permute.xlu1 %678  ;;  %v454_v22 = vmax.f32 %v374_v8, 0.0  ;;  %v355_v44 = vadd.f32 %v3977_v14, %v3949_v2 }
  0xef   :  { %1112 = vmatprep.subr.bf16.mxu1 %v3494_v4  ;;  %v4081_v54 = vpop.f32.mrf.mxu0  ;;  %v524_v30 = vpack.c.bf16 %v456_v29, %v455_v31  ;;  %v453_v28 = vmax.f32 %v371_v12, 0.0  ;;  %v452_v35 = vmax.f32 %v366_v59, 0.0  ;;  %v451_v13 = vmax.f32 %v363_v26, 0.0  ;;  %v2378_v29 = vld [vmem:[%s5035_s8 + $0x10] sm:$0xff]  ;;  %v2377_v12 = vld [vmem:[%s5035_s8 + $0x8] sm:$0xff] }
  0xf0   :  { %v4108_v53 = vpop.permute.xlu0 %673  ;;  %v449_v14 = vmax.f32 %v355_v44, 0.0 }
  0xf1   :  { %1722 = vperm.xlu1 %3273, %v1508_v41   ;;  %1717 = vperm.xlu0 %3272, %v1507_v43   ;;  %v4097_v3 = vpop.f32.mrf.mxu0  ;;  %v358_v41 = vadd.f32 %v3991_v20, %v3957_v6  ;;  %v523_v43 = vpack.c.bf16 %v454_v22, %v453_v28  ;;  %v522_v20 = vpack.c.bf16 %v452_v35, %v451_v13  ;;  %v2399_v22 = vld [vmem:[%s5035_s8 + $0xb8] sm:$0xff]  ;;  %v3286_v35 = vld [vmem:[%s5030_s3] ss:$8 sps:$4 sm:$0xff]  }
  0xf2   :  { %1113 = vmatpush1.bf16.msra.mxu1 %v527_v51  ;;  %v4135_v19 = vpop.permute.xlu1 %698  ;;  %v2382_v51 = vld [vmem:[%s5035_s8 + $0x30] sm:$0xff] }
  0xf3   :  { %1114 = vmatprep.subr.bf16.mxu1 %v3494_v4  ;;  %v3257_v23 = vpop.f32.mrf.mxu0  ;;  %v450_v38 = vmax.f32 %v358_v41, 0.0  ;;  %v2395_v41 = vld [vmem:[%s5035_s8 + $0x98] sm:$0xff] }
  0xf4   :  { %v4125_v56 = vpop.permute.xlu0 %693 }
  0xf5   :  { %2477 = vperm.xlu1 %3273, %v2391_v57   ;;  %2472 = vperm.xlu0 %3272, %v2390_v60   ;;  %v434_v27 = vpop.f32.mrf.mxu0  ;;  %v443_v60 = vadd.f32 %v3257_v23, %v3965_v9  ;;  %v521_v46 = vpack.c.bf16 %v450_v38, %v449_v14 }
  0xf6   :  { %1115 = vmatpush1.bf16.msra.mxu1 %v526_v61  ;;  %v4152_v57 = vpop.permute.xlu1 %668  ;;  %v2380_v61 = vld [vmem:[%s5035_s8 + $0x20] sm:$0xff] }
  0xf7   :  { %1116 = vmatprep.subr.bf16.mxu1 %v3494_v4  ;;  %v3258_v62 = vpop.f32.mrf.mxu0  ;;  %v471_v9 = vmax.f32 %v443_v60, 0.0  ;;  %v2835_v60 = vld [vmem:[%s5037_s10 + $0x10] sm:$0xff] }
  0xf8   :  { %v4149_v6 = vpop.permute.xlu0 %663  ;;  %v446_v55 = vadd.f32 %v3258_v62, %v3967_v10  ;;  %v2394_v62 = vld [vmem:[%s5035_s8 + $0x90] sm:$0xff] }
  0xf9   :  { %2467 = vperm.xlu1 %3273, %v2389_v5   ;;  %2462 = vperm.xlu0 %3272, %v2388_v7   ;;  %v437_v2 = vpop.f32.mrf.mxu0  ;;  %v435_v5 = vadd.f32 %v434_v27, %v3979_v15  ;;  %v2379_v7 = vld [vmem:[%s5035_s8 + $0x18] sm:$0xff]  ;;  %v427_v15 = vadd.f32 %v4063_v21, %v4001_v24  ;;  %v2398_v27 = vld [vmem:[%s5035_s8 + $0xb0] sm:$0xff] }
  0xfa   :  { %1117 = vmatpush1.bf16.msra.mxu1 %v525_v11  ;;  %v472_v10 = vmax.f32 %v446_v55, 0.0  ;;  %v438_v0 = vadd.f32 %v437_v2, %v3987_v18  ;;  %v4172_v8 = vpop.permute.xlu1 %688  ;;  %v430_v18 = vadd.f32 %v4081_v54, %v4003_v25  ;;  %v2836_v55 = vld [vmem:[%s5037_s10 + $0x18] sm:$0xff]  ;;  %v3292_v2 = vld [vmem:[%s5030_s3 + $0x24] ss:$8 sps:$4 sm:$0xff]  }
  0xfb   :  { %1118 = vmatprep.subr.bf16.mxu1 %v3494_v4  ;;  %v469_v31 = vmax.f32 %v435_v5, 0.0  ;;  %v467_v21 = vmax.f32 %v427_v15, 0.0  ;;  %v2937_v5 = vld [vmem:[#allocation2] sm:$0x1]  ;;  %v3303_v15 = vld [vmem:[%s5030_s3 + $0x50] ss:$8 sps:$4 sm:$0xff]  }
  0xfc   :  { %v4163_v40 = vpop.permute.xlu0 %683  ;;  %v532_v11 = vpack.c.bf16 %v472_v10, %v471_v9  ;;  %v470_v23 = vmax.f32 %v438_v0, 0.0  ;;  %v468_v54 = vmax.f32 %v430_v18, 0.0  ;;  %v3295_v9 = vld [vmem:[%s5030_s3 + $0x34] ss:$8 sps:$4 sm:$0xff]   ;;  %v3298_v18 = vld [vmem:[%s5030_s3 + $0x44] ss:$8 sps:$4 sm:$0xff]  }
  0xfd   :  { %2457 = vperm.xlu1 %3273, %v2387_v16   ;;  %2452 = vperm.xlu0 %3272, %v2386_v17   ;;  %v2376_v16 = vld [vmem:[%s5035_s8] sm:$0xff]  ;;  %v422_v17 = vadd.f32 %v4097_v3, %v4025_v37 }
  0xfe   :  { %1119 = vmatpush1.bf16.msra.mxu1 %v524_v30  ;;  %v531_v59 = vpack.c.bf16 %v470_v23, %v469_v31  ;;  %v4190_v24 = vpop.permute.xlu1 %638  ;;  %v419_v30 = vadd.f32 %v4070_v34, %v4017_v33  ;;  %v530_v37 = vpack.c.bf16 %v468_v54, %v467_v21  ;;  %v2397_v33 = vld [vmem:[%s5035_s8 + $0xa8] sm:$0xff]  ;;  %v2396_v34 = vld [vmem:[%s5035_s8 + $0xa0] sm:$0xff]  ;;  %v3301_v23 = vld [vmem:[%s5030_s3 + $0x54] ss:$8 sps:$4 sm:$0xff]  }
  0xff   :  { %1120 = vmatprep.subr.bf16.mxu1 %v3494_v4  ;;  %v466_v3 = vmax.f32 %v422_v17, 0.0  ;;  %v3304_v31 = vld [vmem:[%s5030_s3 + $0x64] ss:$8 sps:$4 sm:$0xff]   ;;  %v3309_v54 = vld [vmem:[%s5030_s3 + $0x70] ss:$8 sps:$4 sm:$0xff]  }
 0x100   :  { %v4186_v25 = vpop.permute.xlu0 %633  ;;  %v465_v28 = vmax.f32 %v419_v30, 0.0  ;;  %v3310_v17 = vld [vmem:[%s5030_s3 + $0x84] ss:$8 sps:$4 sm:$0xff]   ;;  %v3313_v21 = vld [vmem:[%s5030_s3 + $0x94] ss:$8 sps:$4 sm:$0xff]  }
 0x101   :  { %2447 = vperm.xlu1 %3273, %v2385_v39   ;;  %2442 = vperm.xlu0 %3272, %v2384_v63   ;;  %v3315_v30 = vld [vmem:[%s5030_s3 + $0x90] ss:$8 sps:$4 sm:$0xff]  }
 0x102   :  { %1121 = vmatpush1.bf16.msra.mxu1 %v523_v43  ;;  %v4209_v39 = vpop.permute.xlu1 %658  ;;  %v529_v63 = vpack.c.bf16 %v466_v3, %v465_v28  ;;  %v3289_v43 = vld [vmem:[%s5030_s3 + $0x14] ss:$8 sps:$4 sm:$0xff]   ;;  %v3321_v3 = vld [vmem:[%s5030_s3 + $0xb0] ss:$8 sps:$4 sm:$0xff]   ;;  %v3322_v28 = vld [vmem:[%s5030_s3 + $0xc4] ss:$8 sps:$4 sm:$0xff]  }
 0x103   :  { %1122 = vmatprep.subr.bf16.mxu1 %v3494_v4 }
 0x104   :  { %v4201_v26 = vpop.permute.xlu0 %653 }
 0x105   :  { %2437 = vperm.xlu1 %3273, %v2383_v45   ;;  %2432 = vperm.xlu0 %3272, %v2382_v51   ;;  %v2393_v45 = vld [vmem:[%s5035_s8 + $0x88] sm:$0xff]  ;;  %v2392_v51 = vld [vmem:[%s5035_s8 + $0x80] sm:$0xff] }
 0x106   :  { %1123 = vmatpush1.bf16.msra.mxu1 %v522_v20  ;;  %v4227_v44 = vpop.permute.xlu1 %628  ;;  %v3291_v20 = vld [vmem:[%s5030_s3 + $0x10] ss:$8 sps:$4 sm:$0xff]  }
 0x107   :  { %1124 = vmatprep.subr.bf16.mxu1 %v3494_v4 }
 0x108   :  { %v4225_v13 = vpop.permute.xlu0 %623 }
 0x109   :  { %2427 = vperm.xlu1 %3273, %v2381_v50   ;;  %2422 = vperm.xlu0 %3272, %v2380_v61   ;;  %v2834_v50 = vld [vmem:[%s5037_s10 + $0x8] sm:$0xff]  ;;  %v2833_v61 = vld [vmem:[%s5037_s10] sm:$0xff]  ;;  %s3497_s10 = smov [#allocation3]  }
 0x10a   :  { %1125 = vmatpush1.bf16.msra.mxu1 %v521_v46  ;;  %v4247_v14 = vpop.permute.xlu1 %648  ;;  %v3294_v46 = vld [vmem:[%s5030_s3 + $0x20] ss:$8 sps:$4 sm:$0xff]   ;;  %s2998_s4 = sshll.u32 %s3497_s10, 4  ;;  %s2999_s4 = int_to_ptr.vmem [resolvable:$true] %s2998_s4 }
 0x10b   :  { %1134 = vmatprep.subr.bf16.mxu1 %v3494_v4  ;;  %s3472_s26 = scalar_lea.vmem %s2999_s4, 16  ;;  %s3476_s27 = scalar_lea.vmem %s2999_s4, 32 }
 0x10c   :  { %v4239_v38 = vpop.permute.xlu0 %643  ;;  %p3473_p0 = scmp.ne.s32.totalorder %s2999_s4, %s3472_s26  ;;  %p3477_p1 = scmp.lt.s32.totalorder %s2999_s4, %s2999_s4 }
 0x10d   :  { %2417 = vperm.xlu1 %3273, %v2379_v7   ;;  %2412 = vperm.xlu0 %3272, %v2378_v29   ;;  %v3297_v29 = vld [vmem:[%s5030_s3 + $0x30] ss:$8 sps:$4 sm:$0xff]   ;;  %p3478_p2 = scmp.lt.s32.totalorder %s3476_s27, %s3472_s26 }
 0x10e   :  { %1135 = vmatpush2.bf16.msra.mxu1 %v532_v11  ;;  %v4261_v0 = vpop.permute.xlu1 %598  ;;  %v3300_v11 = vld [vmem:[%s5030_s3 + $0x40] ss:$8 sps:$4 sm:$0xff]  }
 0x10f   :  { %1136 = vmatprep.subr.bf16.mxu1 %v3494_v4  ;;  %p3479_p3 = por %p3478_p2, %p3477_p1 }
 0x110   :  { %v4259_v10 = vpop.permute.xlu0 %593 }
 0x111   :  { %2407 = vperm.xlu1 %3273, %v2377_v12   ;;  %2402 = vperm.xlu0 %3272, %v2376_v16   ;;  %v3306_v12 = vld [vmem:[%s5030_s3 + $0x60] ss:$8 sps:$4 sm:$0xff]   ;;  %v3307_v16 = vld [vmem:[%s5030_s3 + $0x74] ss:$8 sps:$4 sm:$0xff]   ;;  %p3480_p4 = pnand %p3479_p3, %p3473_p0 }
 0x112   :  { %1137 = vmatpush2.bf16.msra.mxu1 %v531_v59  ;;  %v3312_v59 = vld [vmem:[%s5030_s3 + $0x80] ss:$8 sps:$4 sm:$0xff]  }
 0x113   :  { %1138 = vmatprep.subr.bf16.mxu1 %v3494_v4 }
 0x114   :  { %v4269_v7 = vpop.permute.xlu0 %613 }
 0x115   :  { %2517 = vperm.xlu1 %3273, %v2399_v22   ;;  %2512 = vperm.xlu0 %3272, %v2398_v27   ;;  %v3316_v22 = vld [vmem:[%s5030_s3 + $0xa4] ss:$8 sps:$4 sm:$0xff]   ;;  %v3318_v27 = vld [vmem:[%s5030_s3 + $0xa0] ss:$8 sps:$4 sm:$0xff]  }
 0x116   :  { %1139 = vmatpush2.bf16.msra.mxu1 %v530_v37  ;;  %v3319_v37 = vld [vmem:[%s5030_s3 + $0xb4] ss:$8 sps:$4 sm:$0xff]  }
 0x117   :  { %1140 = vmatprep.subr.bf16.mxu1 %v3494_v4 }
 0x119   :  { %2507 = vperm.xlu1 %3273, %v2397_v33   ;;  %2502 = vperm.xlu0 %3272, %v2396_v34   ;;  %v3324_v33 = vld [vmem:[%s5030_s3 + $0xc0] ss:$8 sps:$4 sm:$0xff]   ;;  %v3325_v34 = vld [vmem:[%s5030_s3 + $0xd4] ss:$8 sps:$4 sm:$0xff]  }
 0x11a   :  { %1141 = vmatpush2.bf16.msra.mxu1 %v529_v63  ;;  %v3327_v63 = vld [vmem:[%s5030_s3 + $0xd0] ss:$8 sps:$4 sm:$0xff]  }
 0x11b   :  { %2664 = vmatprep.subr.bf16.mxu1 %v3494_v4 }
 0x11d   :  { %1143 = vmatmul.mubr.bf16.vlgmr.msra.gmra.mxu1 %v3286_v35  ;;  %2497 = vperm.xlu1 %3273, %v2395_v41   ;;  %v3328_v35 = vld [vmem:[%s5030_s3 + $0xe4] ss:$8 sps:$4 sm:$0xff]   ;;  %v3330_v41 = vld [vmem:[%s5030_s3 + $0xe0] ss:$8 sps:$4 sm:$0xff]  }
 0x11e   :  { %2492 = vperm.xlu0 %3272, %v2394_v62   ;;  %3079 = vmatprep.mubr.msk.bf16.mxu1 %vm1037_vm2, %v3289_v43  ;;  %v3331_v43 = vld [vmem:[%s5030_s3 + $0xf4] ss:$8 sps:$4 sm:$0xff]   ;;  %v3333_v62 = vld [vmem:[%s5030_s3 + $0xf0] ss:$8 sps:$4 sm:$0xff]  }
 0x121   :  { %2487 = vperm.xlu1 %3273, %v2393_v45   ;;  %v3334_v45 = vld [vmem:[%s5030_s3 + $0x104] ss:$8 sps:$4 sm:$0xff]  }
 0x122   :  { %2482 = vperm.xlu0 %3272, %v2392_v51   ;;  %v3336_v51 = vld [vmem:[%s5030_s3 + $0x100] ss:$8 sps:$4 sm:$0xff]  }
 0x125   :  { %1151 = vmatmul.mubr.bf16.gmra.mxu1 %v3291_v20  ;;  %2854 = vperm.xlu1 %3273, %v2836_v55   ;;  %v3337_v20 = vld [vmem:[%s5030_s3 + $0x114] ss:$8 sps:$4 sm:$0xff]   ;;  %v3339_v55 = vld [vmem:[%s5030_s3 + $0x110] ss:$8 sps:$4 sm:$0xff]  }
 0x126   :  { %2849 = vperm.xlu0 %3272, %v2835_v60   ;;  %3080 = vmatprep.mubr.msk.bf16.mxu1 %vm1037_vm2, %v3292_v2  ;;  %v3340_v2 = vld [vmem:[%s5030_s3 + $0x124] ss:$8 sps:$4 sm:$0xff]   ;;  %v3342_v60 = vld [vmem:[%s5030_s3 + $0x120] ss:$8 sps:$4 sm:$0xff]  }
 0x129   :  { %2844 = vperm.xlu1 %3273, %v2834_v50   ;;  %v3343_v50 = vld [vmem:[%s5030_s3 + $0x134] ss:$8 sps:$4 sm:$0xff]  }
 0x12a   :  { %2839 = vperm.xlu0 %3272, %v2833_v61   ;;  %v3345_v61 = vld [vmem:[%s5030_s3 + $0x130] ss:$8 sps:$4 sm:$0xff]  }
 0x12d   :  { %1159 = vmatmul.mubr.bf16.gmra.mxu1 %v3294_v46  ;;  %v3346_v46 = vld [vmem:[%s5030_s3 + $0x144] ss:$8 sps:$4 sm:$0xff]  }
 0x12e   :  { %2940 = vperm.xlu0 %3272, %v2937_v5   ;;  %3081 = vmatprep.mubr.msk.bf16.mxu1 %vm1037_vm2, %v3295_v9  ;;  %v3348_v9 = vld [vmem:[%s5030_s3 + $0x140] ss:$8 sps:$4 sm:$0xff]   ;;  %v3349_v5 = vld [vmem:[%s5030_s3 + $0x154] ss:$8 sps:$4 sm:$0xff]  }
 0x135   :  { %1167 = vmatmul.mubr.bf16.gmra.mxu1 %v3297_v29  ;;  %v3351_v29 = vld [vmem:[%s5030_s3 + $0x150] ss:$8 sps:$4 sm:$0xff]  }
 0x136   :  { %3082 = vmatprep.mubr.msk.bf16.mxu1 %vm1037_vm2, %v3298_v18  ;;  %v3352_v18 = vld [vmem:[%s5030_s3 + $0x164] ss:$8 sps:$4 sm:$0xff]  }
 0x13d   :  { %1175 = vmatmul.mubr.bf16.gmra.mxu1 %v3300_v11  ;;  %v3354_v11 = vld [vmem:[%s5030_s3 + $0x160] ss:$8 sps:$4 sm:$0xff]  }
 0x13e   :  { %3083 = vmatprep.mubr.msk.bf16.mxu1 %vm1037_vm2, %v3301_v23  ;;  %v3355_v23 = vld [vmem:[%s5030_s3 + $0x174] ss:$8 sps:$4 sm:$0xff]  }
 0x145   :  { %1183 = vmatmul.mubr.bf16.gmra.mxu1 %v3303_v15  ;;  %v3357_v15 = vld [vmem:[%s5030_s3 + $0x170] ss:$8 sps:$4 sm:$0xff]  }
 0x146   :  { %3084 = vmatprep.mubr.msk.bf16.mxu1 %vm1037_vm2, %v3304_v31 }
 0x14d   :  { %1191 = vmatmul.mubr.bf16.gmra.mxu1 %v3306_v12 }
 0x14e   :  { %3085 = vmatprep.mubr.msk.bf16.mxu1 %vm1037_vm2, %v3307_v16 }
 0x155   :  { %1199 = vmatmul.mubr.bf16.gmra.mxu1 %v3309_v54 }
 0x156   :  { %3086 = vmatprep.mubr.msk.bf16.mxu1 %vm1037_vm2, %v3310_v17  ;;  %v619_v17 = vpop.permute.xlu1 %618 }
 0x15d   :  { %1207 = vmatmul.mubr.bf16.gmra.mxu1 %v3312_v59 }
 0x15e   :  { %3087 = vmatprep.mubr.msk.bf16.mxu1 %vm1037_vm2, %v3313_v21  ;;  %v584_v21 = vpop.permute.xlu0 %583 }
 0x165   :  { %1215 = vmatmul.mubr.bf16.gmra.mxu1 %v3315_v30 }
 0x166   :  { %3088 = vmatprep.mubr.msk.bf16.mxu1 %vm1037_vm2, %v3316_v22 }
 0x16d   :  { %1223 = vmatmul.mubr.bf16.gmra.mxu1 %v3318_v27  ;;  %v589_v27 = vpop.permute.xlu1 %588 }
 0x16e   :  { %3089 = vmatprep.mubr.msk.bf16.mxu1 %vm1037_vm2, %v3319_v37 }
 0x175   :  { %1231 = vmatmul.mubr.bf16.gmra.mxu1 %v3321_v3 }
 0x176   :  { %3090 = vmatprep.mubr.msk.bf16.mxu1 %vm1037_vm2, %v3322_v28  ;;  %v604_v28 = vpop.permute.xlu0 %603 }
 0x17d   :  { %1239 = vmatmul.mubr.bf16.gmra.mxu1 %v3324_v33 }
 0x17e   :  { %3091 = vmatprep.mubr.msk.bf16.mxu1 %vm1037_vm2, %v3325_v34 }
 0x185   :  { %1247 = vmatmul.mubr.bf16.gmra.mxu1 %v3327_v63 }
 0x186   :  { %3092 = vmatprep.mubr.msk.bf16.mxu1 %vm1037_vm2, %v3328_v35 }
 0x18d   :  { %1255 = vmatmul.mubr.bf16.gmra.mxu1 %v3330_v41 }
 0x18e   :  { %3093 = vmatprep.mubr.msk.bf16.mxu1 %vm1037_vm2, %v3331_v43 }
 0x195   :  { %1263 = vmatmul.mubr.bf16.gmra.mxu1 %v3333_v62  ;;  %v609_v62 = vpop.permute.xlu1 %608 }
 0x196   :  { %3094 = vmatprep.mubr.msk.bf16.mxu1 %vm1037_vm2, %v3334_v45 }
 0x19d   :  { %1271 = vmatmul.mubr.bf16.gmra.mxu1 %v3336_v51 }
 0x19e   :  { %3095 = vmatprep.mubr.msk.bf16.mxu1 %vm1037_vm2, %v3337_v20 }
 0x1a5   :  { %1279 = vmatmul.mubr.bf16.gmra.mxu1 %v3339_v55 }
 0x1a6   :  { %3096 = vmatprep.mubr.msk.bf16.mxu1 %vm1037_vm2, %v3340_v2 }
 0x1ad   :  { %1287 = vmatmul.mubr.bf16.gmra.mxu1 %v3342_v60 }
 0x1ae   :  { %3097 = vmatprep.mubr.msk.bf16.mxu1 %vm1037_vm2, %v3343_v50 }
 0x1b5   :  { %1295 = vmatmul.mubr.bf16.gmra.mxu1 %v3345_v61 }
 0x1b6   :  { %3098 = vmatprep.mubr.msk.bf16.mxu1 %vm1037_vm2, %v3346_v46 }
 0x1bd   :  { %1303 = vmatmul.mubr.bf16.gmra.mxu1 %v3348_v9 }
 0x1be   :  { %3099 = vmatprep.mubr.msk.bf16.mxu1 %vm1037_vm2, %v3349_v5 }
 0x1c5   :  { %1311 = vmatmul.mubr.bf16.gmra.mxu1 %v3351_v29 }
 0x1c6   :  { %3100 = vmatprep.mubr.msk.bf16.mxu1 %vm1037_vm2, %v3352_v18 }
 0x1cd   :  { %1319 = vmatmul.mubr.bf16.gmra.mxu1 %v3354_v11 }
 0x1ce   :  { %3101 = vmatprep.mubr.msk.bf16.mxu1 %vm1037_vm2, %v3355_v23 }
 0x1d5   :  { %1327 = vmatmul.mubr.bf16.gmra.mxu1 %v3357_v15 }
 0x1dd   :  { %v1144_v31 = vpop.f32.mrf.mxu1 }
 0x1de   :  { %v1145_v3 = vadd.f32 %v1144_v31, %v584_v21 }
 0x1df   :  { %v1146_v12 = vpop.f32.mrf.mxu1 }
 0x1e0   :  { %v1335_v35 = vmax.f32 %v1145_v3, 0.0 }
 0x1e1   :  { %v1147_v16 = vpop.f32.mrf.mxu1 }
 0x1e2   :  { %v1148_v41 = vadd.f32 %v1147_v16, %v589_v27 }
 0x1e3   :  { %v1149_v54 = vpop.f32.mrf.mxu1 }
 0x1e4   :  { %v1336_v2 = vmax.f32 %v1148_v41, 0.0 }
 0x1e5   :  { %v1152_v59 = vpop.f32.mrf.mxu1 }
 0x1e6   :  { %v1153_v60 = vadd.f32 %v1152_v59, %v4259_v10 }
 0x1e7   :  { %v1154_v30 = vpop.f32.mrf.mxu1 }
 0x1e8   :  { %v1337_v29 = vmax.f32 %v1153_v60, 0.0 }
 0x1e9   :  { %v1155_v22 = vpop.f32.mrf.mxu1 }
 0x1ea   :  { %v1156_v18 = vadd.f32 %v1155_v22, %v4261_v0 }
 0x1eb   :  { %v1157_v37 = vpop.f32.mrf.mxu1 }
 0x1ec   :  { %v1338_v10 = vmax.f32 %v1156_v18, 0.0 }
 0x1ed   :  { %v1160_v33 = vpop.f32.mrf.mxu1 }
 0x1ee   :  { %v1161_v34 = vadd.f32 %v1160_v33, %v604_v28 }
 0x1ef   :  { %v1162_v63 = vpop.f32.mrf.mxu1 }
 0x1f0   :  { %v1339_v43 = vmax.f32 %v1161_v34, 0.0 }
 0x1f1   :  { %v1163_v45 = vpop.f32.mrf.mxu1 }
 0x1f2   :  { %v4415_v51 = vmax.f32 %v1335_v35, %v1339_v43  ;;  %v1164_v20 = vadd.f32 %v1163_v45, %v609_v62 }
 0x1f3   :  { %v1165_v55 = vpop.f32.mrf.mxu1 }
 0x1f4   :  { %v1340_v50 = vmax.f32 %v1164_v20, 0.0 }
 0x1f5   :  { %v1168_v61 = vpop.f32.mrf.mxu1 }
 0x1f6   :  { %v4418_v46 = vmax.f32 %v1336_v2, %v1340_v50  ;;  %v1169_v9 = vadd.f32 %v1168_v61, %v4269_v7 }
 0x1f7   :  { %v1170_v5 = vpop.f32.mrf.mxu1 }
 0x1f8   :  { %v1455_v11 = vpack.c.bf16 %v4418_v46, %v4415_v51  ;;  %v1341_v23 = vmax.f32 %v1169_v9, 0.0 }
 0x1f9   :  { %v1171_v15 = vpop.f32.mrf.mxu1 }
 0x1fa   :  { %v4424_v31 = vmax.f32 %v1337_v29, %v1341_v23  ;;  %v1172_v12 = vadd.f32 %v1171_v15, %v619_v17 }
 0x1fb   :  { %v1173_v16 = vpop.f32.mrf.mxu1 }
 0x1fc   :  { %v1342_v54 = vmax.f32 %v1172_v12, 0.0 }
 0x1fd   :  { %v1176_v59 = vpop.f32.mrf.mxu1 }
 0x1fe   :  { %v4426_v21 = vmax.f32 %v1338_v10, %v1342_v54  ;;  %v1177_v33 = vadd.f32 %v1176_v59, %v4225_v13 }
 0x1ff   :  { %v1178_v30 = vpop.f32.mrf.mxu1 }
 0x200   :  { %v1456_v7 = vpack.c.bf16 %v4426_v21, %v4424_v31  ;;  %v1343_v35 = vmax.f32 %v1177_v33, 0.0 }
 0x201   :  { %v1179_v27 = vpop.f32.mrf.mxu1 }
 0x202   :  { %v1180_v41 = vadd.f32 %v1179_v27, %v4227_v44 }
 0x203   :  { %v1181_v0 = vpop.f32.mrf.mxu1 }
 0x204   :  { %v1344_v2 = vmax.f32 %v1180_v41, 0.0 }
 0x205   :  { %v1184_v22 = vpop.f32.mrf.mxu1 }
 0x206   :  { %v1185_v60 = vadd.f32 %v1184_v22, %v4186_v25 }
 0x207   :  { %v1186_v37 = vpop.f32.mrf.mxu1 }
 0x208   :  { %v1345_v5 = vmax.f32 %v1185_v60, 0.0 }
 0x209   :  { %v1187_v3 = vpop.f32.mrf.mxu1 }
 0x20a   :  { %v1188_v44 = vadd.f32 %v1187_v3, %v4190_v24 }
 0x20b   :  { %v1189_v28 = vpop.f32.mrf.mxu1 }
 0x20c   :  { %v1346_v12 = vmax.f32 %v1188_v44, 0.0  ;;  %v3360_v28 = vld [vmem:[%s5032_s5 + $0x4] ss:$8 sps:$4 sm:$0xff]   ;;  %v4466_v44 = vpop.permute.xlu0 %793 }
 0x20d   :  { %v1192_v34 = vpop.f32.mrf.mxu1  ;;  %3150 = vmatprep.mubr.msk.bf16.mxu0 %vm1037_vm2, %v3360_v28 }
 0x20e   :  { %v1193_v17 = vadd.f32 %v1192_v34, %v4239_v38 }
 0x20f   :  { %v1194_v63 = vpop.f32.mrf.mxu1 }
 0x210   :  { %v1347_v43 = vmax.f32 %v1193_v17, 0.0 }
 0x211   :  { %v1195_v62 = vpop.f32.mrf.mxu1 }
 0x212   :  { %v4433_v45 = vmax.f32 %v1343_v35, %v1347_v43  ;;  %v1196_v20 = vadd.f32 %v1195_v62, %v4247_v14 }
 0x213   :  { %v1197_v55 = vpop.f32.mrf.mxu1 }
 0x214   :  { %v1348_v50 = vmax.f32 %v1196_v20, 0.0 }
 0x215   :  { %v1200_v61 = vpop.f32.mrf.mxu1 }
 0x216   :  { %v4437_v13 = vmax.f32 %v1344_v2, %v1348_v50  ;;  %v1201_v38 = vadd.f32 %v1200_v61, %v4201_v26 }
 0x217   :  { %v1202_v9 = vpop.f32.mrf.mxu1 }
 0x218   :  { %v1457_v29 = vpack.c.bf16 %v4437_v13, %v4433_v45  ;;  %v1349_v18 = vmax.f32 %v1201_v38, 0.0 }
 0x219   :  { %v1203_v23 = vpop.f32.mrf.mxu1 }
 0x21a   :  { %v4443_v14 = vmax.f32 %v1345_v5, %v1349_v18  ;;  %v1204_v15 = vadd.f32 %v1203_v23, %v4209_v39  ;;  %v4468_v23 = vpop.permute.xlu1 %798 }
 0x21b   :  { %v1205_v25 = vpop.f32.mrf.mxu1 }
 0x21c   :  { %v1350_v16 = vmax.f32 %v1204_v15, 0.0  ;;  %v4470_v25 = vpop.permute.xlu0 %813 }
 0x21d   :  { %v1208_v10 = vpop.f32.mrf.mxu1 }
 0x21e   :  { %v4446_v54 = vmax.f32 %v1346_v12, %v1350_v16  ;;  %v1209_v34 = vadd.f32 %v1208_v10, %v4149_v6  ;;  %v4472_v10 = vpop.permute.xlu1 %818 }
 0x21f   :  { %v1210_v26 = vpop.f32.mrf.mxu1 }
 0x220   :  { %v1458_v59 = vpack.c.bf16 %v4446_v54, %v4443_v14  ;;  %v1351_v62 = vmax.f32 %v1209_v34, 0.0 }
 0x221   :  { %v1211_v24 = vpop.f32.mrf.mxu1 }
 0x222   :  { %v1212_v17 = vadd.f32 %v1211_v24, %v4152_v57  ;;  %v4474_v24 = vpop.permute.xlu0 %783 }
 0x223   :  { %v1213_v30 = vpop.f32.mrf.mxu1 }
 0x224   :  { %v1352_v20 = vmax.f32 %v1212_v17, 0.0 }
 0x225   :  { %v4450_v27 = vpop.f32.mrf.mxu1 }
 0x227   :  { %v1218_v0 = vpop.f32.mrf.mxu1 }
 0x229   :  { %v1219_v22 = vpop.f32.mrf.mxu1 }
 0x22b   :  { %v1221_v37 = vpop.f32.mrf.mxu1 }
 0x22c   :  { %v4476_v37 = vpop.permute.xlu1 %788 }
 0x22d   :  { %v1224_v3 = vpop.f32.mrf.mxu1 }
 0x22e   :  { %v1225_v39 = vadd.f32 %v1224_v3, %v4163_v40 }
 0x22f   :  { %v1226_v33 = vpop.f32.mrf.mxu1 }
 0x230   :  { %v1355_v35 = vmax.f32 %v1225_v39, 0.0  ;;  %v4478_v39 = vpop.permute.xlu0 %803 }
 0x231   :  { %v1227_v63 = vpop.f32.mrf.mxu1 }
 0x232   :  { %v1228_v41 = vadd.f32 %v1227_v63, %v4172_v8  ;;  %v4460_v2 = vmax.f32 %v1351_v62, %v1355_v35 }
 0x233   :  { %v1229_v43 = vpop.f32.mrf.mxu1 }
 0x234   :  { %v1356_v55 = vmax.f32 %v1228_v41, 0.0  ;;  %v4484_v41 = vpop.permute.xlu1 %808 }
 0x235   :  { %v1232_v40 = vpop.f32.mrf.mxu1 }
 0x236   :  { %v4462_v60 = vmax.f32 %v1352_v20, %v1356_v55 }
 0x237   :  { %v1234_v50 = vpop.f32.mrf.mxu1 }
 0x238   :  { %v1459_v6 = vpack.c.bf16 %v4462_v60, %v4460_v2 }
 0x239   :  { %v1235_v57 = vpop.f32.mrf.mxu1 }
 0x23b   :  { %v1237_v61 = vpop.f32.mrf.mxu1 }
 0x23c   :  { %v4489_v61 = vpop.permute.xlu0 %753 }
 0x23d   :  { %v1240_v38 = vpop.f32.mrf.mxu1 }
 0x23f   :  { %v1242_v9 = vpop.f32.mrf.mxu1 }
 0x241   :  { %v1243_v5 = vpop.f32.mrf.mxu1 }
 0x242   :  { %v1244_v62 = vadd.f32 %v1243_v5, %v4068_v32  ;;  %v1233_v32 = vadd.f32 %v1232_v40, %v4125_v56 }
 0x243   :  { %v1245_v8 = vpop.f32.mrf.mxu1 }
 0x244   :  { %v1357_v56 = vmax.f32 %v1233_v32, 0.0 }
 0x245   :  { %v1248_v18 = vpop.f32.mrf.mxu1 }
 0x246   :  { %v1249_v17 = vadd.f32 %v1248_v18, %v4033_v47  ;;  %v1241_v47 = vadd.f32 %v1240_v38, %v4065_v36 }
 0x247   :  { %v1250_v15 = vpop.f32.mrf.mxu1 }
 0x248   :  { %v1220_v15 = vadd.f32 %v1219_v22, %v4112_v52  ;;  %v1359_v38 = vmax.f32 %v1241_v47, 0.0 }
 0x249   :  { %v1251_v12 = vpop.f32.mrf.mxu1 }
 0x24a   :  { %v1252_v63 = vadd.f32 %v1251_v12, %v4035_v48  ;;  %v1361_v48 = vmax.f32 %v1249_v17, 0.0  ;;  %v1354_v22 = vmax.f32 %v1220_v15, 0.0 }
 0x24b   :  { %v1253_v16 = vpop.f32.mrf.mxu1 }
 0x24c   :  { %v1362_v8 = vmax.f32 %v1252_v63, 0.0 }
 0x24d   :  { %v1256_v26 = vpop.f32.mrf.mxu1 }
 0x24e   :  { %v1257_v20 = vadd.f32 %v1256_v26, %v4083_v42  ;;  %v1360_v42 = vmax.f32 %v1244_v62, 0.0  ;;  %v4495_v26 = vpop.permute.xlu1 %758 }
 0x24f   :  { %v1258_v30 = vpop.f32.mrf.mxu1 }
 0x250   :  { %v1363_v12 = vmax.f32 %v1257_v20, 0.0 }
 0x251   :  { %v1259_v0 = vpop.f32.mrf.mxu1 }
 0x252   :  { %v1260_v35 = vadd.f32 %v1259_v0, %v4092_v49  ;;  %v1395_v40 = vmax.f32 %v1359_v38, %v1363_v12  ;;  %v4502_v63 = vpop.permute.xlu1 %778 }
 0x253   :  { %v1261_v3 = vpop.f32.mrf.mxu1 }
 0x254   :  { %v1364_v49 = vmax.f32 %v1260_v35, 0.0  ;;  %v4499_v3 = vpop.permute.xlu0 %773 }
 0x255   :  { %v1264_v28 = vpop.f32.mrf.mxu1 }
 0x256   :  { %v1265_v33 = vadd.f32 %v1264_v28, %v4043_v58  ;;  %v1236_v58 = vadd.f32 %v1235_v57, %v4135_v19  ;;  %v1217_v19 = vadd.f32 %v4450_v27, %v4108_v53  ;;  %v1396_v30 = vmax.f32 %v1360_v42, %v1364_v49 }
 0x257   :  { %v1266_v34 = vpop.f32.mrf.mxu1 }
 0x258   :  { %v1365_v55 = vmax.f32 %v1265_v33, 0.0  ;;  %v1358_v57 = vmax.f32 %v1236_v58, 0.0  ;;  %v1353_v33 = vmax.f32 %v1217_v19, 0.0  ;;  %v1461_v17 = vpack.c.bf16 %v1396_v30, %v1395_v40  ;;  %v744_v35 = vpop.permute.xlu0 %743 }
 0x259   :  { %v1267_v43 = vpop.f32.mrf.mxu1 }
 0x25a   :  { %v1268_v50 = vadd.f32 %v1267_v43, %v4052_v1  ;;  %v1397_v16 = vmax.f32 %v1361_v48, %v1365_v55  ;;  %v1394_v34 = vmax.f32 %v1354_v22, %v1358_v57  ;;  %v1393_v27 = vmax.f32 %v1353_v33, %v1357_v56  ;;  %v749_v55 = vpop.permute.xlu1 %748 }
 0x25b   :  { %v1269_v9 = vpop.f32.mrf.mxu1 }
 0x25c   :  { %v1366_v18 = vmax.f32 %v1268_v50, 0.0  ;;  %v1460_v62 = vpack.c.bf16 %v1394_v34, %v1393_v27  ;;  %v764_v58 = vpop.permute.xlu0 %763 }
 0x25d   :  { %v1272_v5 = vpop.f32.mrf.mxu1 }
 0x25e   :  { %v1398_v1 = vmax.f32 %v1362_v8, %v1366_v18  ;;  %v1273_v8 = vadd.f32 %v1272_v5, %v744_v35  ;;  %v769_v18 = vpop.permute.xlu1 %768 }
 0x25f   :  { %v1274_v36 = vpop.f32.mrf.mxu1 }
 0x260   :  { %v1462_v0 = vpack.c.bf16 %v1398_v1, %v1397_v16  ;;  %v1367_v16 = vmax.f32 %v1273_v8, 0.0 }
 0x261   :  { %v1275_v52 = vpop.f32.mrf.mxu1 }
 0x262   :  { %2044 = vmatpush1.bf16.msra.mxu0 %v1462_v0  ;;  %v1276_v49 = vadd.f32 %v1275_v52, %v749_v55 }
 0x263   :  { %v1277_v28 = vpop.f32.mrf.mxu1  ;;  %2045 = vmatprep.subr.bf16.mxu0 %v3494_v4 }
 0x264   :  { %v1368_v1 = vmax.f32 %v1276_v49, 0.0 }
 0x265   :  { %v4504_v53 = vpop.f32.mrf.mxu1 }
 0x266   :  { %2046 = vmatpush1.bf16.msra.mxu0 %v1461_v17 }
 0x267   :  { %v1282_v43 = vpop.f32.mrf.mxu1  ;;  %2047 = vmatprep.subr.bf16.mxu0 %v3494_v4 }
 0x269   :  { %v4507_v20 = vpop.f32.mrf.mxu1 }
 0x26a   :  { %2048 = vmatpush1.bf16.msra.mxu0 %v1460_v62 }
 0x26b   :  { %v1285_v50 = vpop.f32.mrf.mxu1  ;;  %2049 = vmatprep.subr.bf16.mxu0 %v3494_v4 }
 0x26d   :  { %v1288_v47 = vpop.f32.mrf.mxu1 }
 0x26e   :  { %v1289_v9 = vadd.f32 %v1288_v47, %v764_v58  ;;  %2050 = vmatpush1.bf16.msra.mxu0 %v1459_v6 }
 0x26f   :  { %v1290_v48 = vpop.f32.mrf.mxu1  ;;  %2051 = vmatprep.subr.bf16.mxu0 %v3494_v4 }
 0x270   :  { %v1371_v32 = vmax.f32 %v1289_v9, 0.0 }
 0x271   :  { %v1291_v15 = vpop.f32.mrf.mxu1 }
 0x272   :  { %v1292_v42 = vadd.f32 %v1291_v15, %v769_v18  ;;  %2052 = vmatpush1.bf16.msra.mxu0 %v1458_v59  ;;  %v4518_v6 = vmax.f32 %v1367_v16, %v1371_v32  ;;  %v3366_v16 = vld [vmem:[%s5032_s5 + $0x20] ss:$8 sps:$4 sm:$0xff]  }
 0x273   :  { %v1293_v12 = vpop.f32.mrf.mxu1  ;;  %2053 = vmatprep.subr.bf16.mxu0 %v3494_v4 }
 0x274   :  { %v1372_v2 = vmax.f32 %v1292_v42, 0.0  ;;  %v3363_v42 = vld [vmem:[%s5032_s5 + $0x10] ss:$8 sps:$4 sm:$0xff]   ;;  %v3364_v12 = vld [vmem:[%s5032_s5 + $0x24] ss:$8 sps:$4 sm:$0xff]  }
 0x275   :  { %v1296_v60 = vpop.f32.mrf.mxu1 }
 0x276   :  { %v4520_v19 = vmax.f32 %v1368_v1, %v1372_v2  ;;  %2054 = vmatpush1.bf16.msra.mxu0 %v1457_v29  ;;  %v3367_v1 = vld [vmem:[%s5032_s5 + $0x34] ss:$8 sps:$4 sm:$0xff]   ;;  %v3369_v2 = vld [vmem:[%s5032_s5 + $0x30] ss:$8 sps:$4 sm:$0xff]  }
 0x277   :  { %v1298_v5 = vpop.f32.mrf.mxu1  ;;  %2055 = vmatprep.subr.bf16.mxu0 %v3494_v4 }
 0x278   :  { %v1463_v14 = vpack.c.bf16 %v4520_v19, %v4518_v6  ;;  %v3372_v6 = vld [vmem:[%s5032_s5 + $0x40] ss:$8 sps:$4 sm:$0xff]   ;;  %v3373_v19 = vld [vmem:[%s5032_s5 + $0x54] ss:$8 sps:$4 sm:$0xff]   ;;  %v3375_v5 = vld [vmem:[%s5032_s5 + $0x50] ss:$8 sps:$4 sm:$0xff]  }
 0x279   :  { %v1299_v54 = vpop.f32.mrf.mxu1 }
 0x27a   :  { %2056 = vmatpush1.bf16.msra.mxu0 %v1456_v7  ;;  %v1300_v35 = vadd.f32 %v1299_v54, %v4502_v63  ;;  %v3378_v54 = vld [vmem:[%s5032_s5 + $0x60] ss:$8 sps:$4 sm:$0xff]  }
 0x27b   :  { %v1301_v59 = vpop.f32.mrf.mxu1  ;;  %2057 = vmatprep.subr.bf16.mxu0 %v3494_v4 }
 0x27c   :  { %v1374_v63 = vmax.f32 %v1300_v35, 0.0  ;;  %v3379_v59 = vld [vmem:[%s5032_s5 + $0x74] ss:$8 sps:$4 sm:$0xff]   ;;  %v4682_v35 = vpop.permute.xlu1 %1632 }
 0x27d   :  { %v1304_v36 = vpop.f32.mrf.mxu1 }
 0x27e   :  { %2058 = vmatpush1.bf16.msra.mxu0 %v1455_v11  ;;  %v1305_v43 = vadd.f32 %v1304_v36, %v4474_v24  ;;  %v3381_v36 = vld [vmem:[%s5032_s5 + $0x70] ss:$8 sps:$4 sm:$0xff]  }
 0x27f   :  { %v1306_v45 = vpop.f32.mrf.mxu1  ;;  %2067 = vmatprep.subr.bf16.mxu0 %v3494_v4 }
 0x280   :  { %v1375_v9 = vmax.f32 %v1305_v43, 0.0  ;;  %v3382_v45 = vld [vmem:[%s5032_s5 + $0x84] ss:$8 sps:$4 sm:$0xff]  }
 0x281   :  { %v1307_v13 = vpop.f32.mrf.mxu1 }
 0x282   :  { %v1308_v33 = vadd.f32 %v1307_v13, %v4476_v37  ;;  %v3384_v13 = vld [vmem:[%s5032_s5 + $0x80] ss:$8 sps:$4 sm:$0xff]  }
 0x283   :  { %v1309_v29 = vpop.f32.mrf.mxu1 }
 0x284   :  { %v1376_v37 = vmax.f32 %v1308_v33, 0.0  ;;  %v3385_v29 = vld [vmem:[%s5032_s5 + $0x94] ss:$8 sps:$4 sm:$0xff]  }
 0x285   :  { %v1312_v57 = vpop.f32.mrf.mxu1  ;;  %v3409_v33 = vld [vmem:[%s5032_s5 + $0x114] ss:$8 sps:$4 sm:$0xff]  }
 0x286   :  { %v1313_v51 = vadd.f32 %v1312_v57, %v4466_v44  ;;  %v3387_v57 = vld [vmem:[%s5032_s5 + $0x90] ss:$8 sps:$4 sm:$0xff]  }
 0x287   :  { %v1314_v38 = vpop.f32.mrf.mxu1 }
 0x288   :  { %v1377_v62 = vmax.f32 %v1313_v51, 0.0  ;;  %v3388_v38 = vld [vmem:[%s5032_s5 + $0xa4] ss:$8 sps:$4 sm:$0xff]   ;;  %v3403_v51 = vld [vmem:[%s5032_s5 + $0xf4] ss:$8 sps:$4 sm:$0xff]  }
 0x289   :  { %v1315_v30 = vpop.f32.mrf.mxu1 }
 0x28a   :  { %v1316_v46 = vadd.f32 %v1315_v30, %v4468_v23  ;;  %v1284_v23 = vadd.f32 %v4507_v20, %v4495_v26  ;;  %v3390_v30 = vld [vmem:[%s5032_s5 + $0xa0] ss:$8 sps:$4 sm:$0xff]  }
 0x28b   :  { %v1317_v0 = vpop.f32.mrf.mxu1 }
 0x28c   :  { %v1378_v55 = vmax.f32 %v1316_v46, 0.0  ;;  %v1370_v8 = vmax.f32 %v1284_v23, 0.0  ;;  %v3391_v0 = vld [vmem:[%s5032_s5 + $0xb4] ss:$8 sps:$4 sm:$0xff]   ;;  %v3405_v46 = vld [vmem:[%s5032_s5 + $0xf0] ss:$8 sps:$4 sm:$0xff]  }
 0x28d   :  { %v1320_v52 = vpop.f32.mrf.mxu1  ;;  %v3418_v23 = vld [vmem:[%s5032_s5 + $0x144] ss:$8 sps:$4 sm:$0xff]  }
 0x28e   :  { %v1321_v34 = vadd.f32 %v1320_v52, %v4478_v39  ;;  %v1402_v20 = vmax.f32 %v1370_v8, %v1374_v63  ;;  %v3393_v52 = vld [vmem:[%s5032_s5 + $0xb0] ss:$8 sps:$4 sm:$0xff]  }
 0x28f   :  { %v1322_v31 = vpop.f32.mrf.mxu1 }
 0x290   :  { %v1379_v58 = vmax.f32 %v1321_v34, 0.0  ;;  %v3394_v31 = vld [vmem:[%s5032_s5 + $0xc4] ss:$8 sps:$4 sm:$0xff]   ;;  %v3411_v34 = vld [vmem:[%s5032_s5 + $0x110] ss:$8 sps:$4 sm:$0xff]  }
 0x291   :  { %v1323_v21 = vpop.f32.mrf.mxu1 }
 0x292   :  { %v1324_v11 = vadd.f32 %v1323_v21, %v4484_v41  ;;  %v1297_v41 = vadd.f32 %v1296_v60, %v4499_v3  ;;  %v1403_v18 = vmax.f32 %v1375_v9, %v1379_v58  ;;  %v3370_v60 = vld [vmem:[%s5032_s5 + $0x44] ss:$8 sps:$4 sm:$0xff]   ;;  %v3396_v21 = vld [vmem:[%s5032_s5 + $0xc0] ss:$8 sps:$4 sm:$0xff]  }
 0x293   :  { %v1325_v7 = vpop.f32.mrf.mxu1 }
 0x294   :  { %v1380_v44 = vmax.f32 %v1324_v11, 0.0  ;;  %v1373_v49 = vmax.f32 %v1297_v41, 0.0  ;;  %v3397_v7 = vld [vmem:[%s5032_s5 + $0xd4] ss:$8 sps:$4 sm:$0xff]   ;;  %v3406_v11 = vld [vmem:[%s5032_s5 + $0x104] ss:$8 sps:$4 sm:$0xff]  }
 0x295   :  { %v1328_v22 = vpop.f32.mrf.mxu1 }
 0x296   :  { %v1329_v56 = vadd.f32 %v1328_v22, %v4470_v25  ;;  %v1404_v24 = vmax.f32 %v1376_v37, %v1380_v44  ;;  %v3399_v22 = vld [vmem:[%s5032_s5 + $0xd0] ss:$8 sps:$4 sm:$0xff]  }
 0x297   :  { %v1330_v40 = vpop.f32.mrf.mxu1 }
 0x298   :  { %v1381_v17 = vmax.f32 %v1329_v56, 0.0  ;;  %v1465_v3 = vpack.c.bf16 %v1404_v24, %v1403_v18  ;;  %v3400_v56 = vld [vmem:[%s5032_s5 + $0xe4] ss:$8 sps:$4 sm:$0xff]   ;;  %v3402_v40 = vld [vmem:[%s5032_s5 + $0xe0] ss:$8 sps:$4 sm:$0xff]  }
 0x299   :  { %v1331_v28 = vpop.f32.mrf.mxu1  ;;  %v3423_v24 = vld [vmem:[%s5032_s5 + $0x150] ss:$8 sps:$4 sm:$0xff]   ;;  %v3426_v18 = vld [vmem:[%s5032_s5 + $0x160] ss:$8 sps:$4 sm:$0xff]  }
 0x29a   :  { %v1332_v27 = vadd.f32 %v1331_v28, %v4472_v10  ;;  %v1405_v39 = vmax.f32 %v1377_v62, %v1381_v17  ;;  %v1281_v10 = vadd.f32 %v4504_v53, %v4489_v61  ;;  %v3358_v61 = vld [vmem:[%s5032_s5] ss:$8 sps:$4 sm:$0xff]   ;;  %v3361_v53 = vld [vmem:[%s5032_s5 + $0x14] ss:$8 sps:$4 sm:$0xff]   ;;  %v3412_v17 = vld [vmem:[%s5032_s5 + $0x124] ss:$8 sps:$4 sm:$0xff]  }
 0x29b   :  { %v1333_v25 = vpop.f32.mrf.mxu1  ;;  %v3408_v28 = vld [vmem:[%s5032_s5 + $0x100] ss:$8 sps:$4 sm:$0xff]   ;;  %v3415_v62 = vld [vmem:[%s5032_s5 + $0x134] ss:$8 sps:$4 sm:$0xff]  }
 0x29c   :  { %v1382_v50 = vmax.f32 %v1332_v27, 0.0  ;;  %v1369_v26 = vmax.f32 %v1281_v10, 0.0  ;;  %v4679_v27 = vpop.permute.xlu0 %1627  ;;  %v3414_v25 = vld [vmem:[%s5032_s5 + $0x120] ss:$8 sps:$4 sm:$0xff]  }
 0x29e   :  { %v1406_v47 = vmax.f32 %v1378_v55, %v1382_v50  ;;  %v1401_v15 = vmax.f32 %v1369_v26, %v1373_v49  ;;  %v4692_v55 = vpop.permute.xlu1 %1672  ;;  %v3417_v50 = vld [vmem:[%s5032_s5 + $0x130] ss:$8 sps:$4 sm:$0xff]   ;;  %v3427_v26 = vld [vmem:[%s5032_s5 + $0x174] ss:$8 sps:$4 sm:$0xff]  }
 0x2a0   :  { %v1466_v48 = vpack.c.bf16 %v1406_v47, %v1405_v39  ;;  %v1464_v32 = vpack.c.bf16 %v1402_v20, %v1401_v15  ;;  %v4684_v43 = vpop.permute.xlu0 %1667  ;;  %v3420_v39 = vld [vmem:[%s5032_s5 + $0x140] ss:$8 sps:$4 sm:$0xff]   ;;  %v3421_v47 = vld [vmem:[%s5032_s5 + $0x154] ss:$8 sps:$4 sm:$0xff]  }
 0x2a2   :  { %2068 = vmatpush2.bf16.msra.mxu0 %v1466_v48  ;;  %v4703_v41 = vpop.permute.xlu1 %1622  ;;  %v3424_v48 = vld [vmem:[%s5032_s5 + $0x164] ss:$8 sps:$4 sm:$0xff]  }
 0x2a3   :  { %2069 = vmatprep.subr.bf16.mxu0 %v3494_v4 }
 0x2a4   :  { %v4695_v44 = vpop.permute.xlu0 %1617 }
 0x2a6   :  { %2070 = vmatpush2.bf16.msra.mxu0 %v1465_v3  ;;  %v4708_v58 = vpop.permute.xlu1 %1662 }
 0x2a7   :  { %2071 = vmatprep.subr.bf16.mxu0 %v3494_v4 }
 0x2a8   :  { %v4705_v37 = vpop.permute.xlu0 %1657 }
 0x2aa   :  { %2072 = vmatpush2.bf16.msra.mxu0 %v1464_v32  ;;  %v4719_v63 = vpop.permute.xlu1 %1612  ;;  %v3429_v32 = vld [vmem:[%s5032_s5 + $0x170] ss:$8 sps:$4 sm:$0xff]  }
 0x2ab   :  { %2073 = vmatprep.subr.bf16.mxu0 %v3494_v4 }
 0x2ac   :  { %v4716_v10 = vpop.permute.xlu0 %1607 }
 0x2ae   :  { %2074 = vmatpush2.bf16.msra.mxu0 %v1463_v14  ;;  %v3376_v14 = vld [vmem:[%s5032_s5 + $0x64] ss:$8 sps:$4 sm:$0xff]   ;;  %v4729_v8 = vpop.permute.xlu1 %1652 }
 0x2af   :  { %2881 = vmatprep.subr.bf16.mxu0 %v3494_v4 }
 0x2b0   :  { %v4721_v9 = vpop.permute.xlu0 %1647 }
 0x2b1   :  { %2076 = vmatmul.mubr.bf16.vlgmr.msra.gmra.mxu0 %v3358_v61 }
 0x2b2   :  { %3151 = vmatprep.mubr.msk.bf16.mxu0 %vm1037_vm2, %v3361_v53  ;;  %v4740_v20 = vpop.permute.xlu1 %1602 }
 0x2b4   :  { %v4732_v49 = vpop.permute.xlu0 %1597 }
 0x2b6   :  { %v4745_v15 = vpop.permute.xlu1 %1642 }
 0x2b8   :  { %v4742_v3 = vpop.permute.xlu0 %1637 }
 0x2b9   :  { %2084 = vmatmul.mubr.bf16.gmra.mxu0 %v3363_v42 }
 0x2ba   :  { %3152 = vmatprep.mubr.msk.bf16.mxu0 %vm1037_vm2, %v3364_v12  ;;  %v4752_v53 = vpop.permute.xlu1 %1552 }
 0x2bc   :  { %v4750_v61 = vpop.permute.xlu0 %1547 }
 0x2be   :  { %v4756_v12 = vpop.permute.xlu1 %1592 }
 0x2c0   :  { %v4754_v42 = vpop.permute.xlu0 %1587 }
 0x2c1   :  { %2092 = vmatmul.mubr.bf16.gmra.mxu0 %v3366_v16 }
 0x2c2   :  { %3153 = vmatprep.mubr.msk.bf16.mxu0 %vm1037_vm2, %v3367_v1 }
 0x2c4   :  { %v1538_v1 = vpop.permute.xlu0 %1537 }
 0x2c9   :  { %2100 = vmatmul.mubr.bf16.gmra.mxu0 %v3369_v2 }
 0x2ca   :  { %3154 = vmatprep.mubr.msk.bf16.mxu0 %vm1037_vm2, %v3370_v60 }
 0x2d1   :  { %2108 = vmatmul.mubr.bf16.gmra.mxu0 %v3372_v6  ;;  %v1543_v6 = vpop.permute.xlu1 %1542 }
 0x2d2   :  { %3155 = vmatprep.mubr.msk.bf16.mxu0 %vm1037_vm2, %v3373_v19 }
 0x2d9   :  { %2116 = vmatmul.mubr.bf16.gmra.mxu0 %v3375_v5  ;;  %v1578_v5 = vpop.permute.xlu0 %1577 }
 0x2da   :  { %3156 = vmatprep.mubr.msk.bf16.mxu0 %vm1037_vm2, %v3376_v14 }
 0x2e1   :  { %2124 = vmatmul.mubr.bf16.gmra.mxu0 %v3378_v54 }
 0x2e2   :  { %3157 = vmatprep.mubr.msk.bf16.mxu0 %vm1037_vm2, %v3379_v59  ;;  %v1583_v59 = vpop.permute.xlu1 %1582 }
 0x2e9   :  { %2132 = vmatmul.mubr.bf16.gmra.mxu0 %v3381_v36 }
 0x2ea   :  { %3158 = vmatprep.mubr.msk.bf16.mxu0 %vm1037_vm2, %v3382_v45  ;;  %v1528_v45 = vpop.permute.xlu0 %1527 }
 0x2f1   :  { %2140 = vmatmul.mubr.bf16.gmra.mxu0 %v3384_v13 }
 0x2f2   :  { %3159 = vmatprep.mubr.msk.bf16.mxu0 %vm1037_vm2, %v3385_v29 }
 0x2f9   :  { %2148 = vmatmul.mubr.bf16.gmra.mxu0 %v3387_v57  ;;  %v1533_v57 = vpop.permute.xlu1 %1532 }
 0x2fa   :  { %3160 = vmatprep.mubr.msk.bf16.mxu0 %vm1037_vm2, %v3388_v38 }
 0x301   :  { %2156 = vmatmul.mubr.bf16.gmra.mxu0 %v3390_v30  ;;  %v1568_v30 = vpop.permute.xlu0 %1567 }
 0x302   :  { %3161 = vmatprep.mubr.msk.bf16.mxu0 %vm1037_vm2, %v3391_v0 }
 0x309   :  { %2164 = vmatmul.mubr.bf16.gmra.mxu0 %v3393_v52 }
 0x30a   :  { %3162 = vmatprep.mubr.msk.bf16.mxu0 %vm1037_vm2, %v3394_v31  ;;  %v1573_v31 = vpop.permute.xlu1 %1572 }
 0x311   :  { %2172 = vmatmul.mubr.bf16.gmra.mxu0 %v3396_v21 }
 0x312   :  { %3163 = vmatprep.mubr.msk.bf16.mxu0 %vm1037_vm2, %v3397_v7  ;;  %v1518_v7 = vpop.permute.xlu0 %1517 }
 0x319   :  { %2180 = vmatmul.mubr.bf16.gmra.mxu0 %v3399_v22 }
 0x31a   :  { %3164 = vmatprep.mubr.msk.bf16.mxu0 %vm1037_vm2, %v3400_v56 }
 0x321   :  { %2188 = vmatmul.mubr.bf16.gmra.mxu0 %v3402_v40  ;;  %v1523_v40 = vpop.permute.xlu1 %1522 }
 0x322   :  { %3165 = vmatprep.mubr.msk.bf16.mxu0 %vm1037_vm2, %v3403_v51 }
 0x329   :  { %2196 = vmatmul.mubr.bf16.gmra.mxu0 %v3405_v46 }
 0x32a   :  { %3166 = vmatprep.mubr.msk.bf16.mxu0 %vm1037_vm2, %v3406_v11  ;;  %v1558_v11 = vpop.permute.xlu0 %1557 }
 0x331   :  { %2204 = vmatmul.mubr.bf16.gmra.mxu0 %v3408_v28 }
 0x332   :  { %3167 = vmatprep.mubr.msk.bf16.mxu0 %vm1037_vm2, %v3409_v33 }
 0x339   :  { %2212 = vmatmul.mubr.bf16.gmra.mxu0 %v3411_v34 }
 0x33a   :  { %3168 = vmatprep.mubr.msk.bf16.mxu0 %vm1037_vm2, %v3412_v17 }
 0x341   :  { %2220 = vmatmul.mubr.bf16.gmra.mxu0 %v3414_v25 }
 0x342   :  { %3169 = vmatprep.mubr.msk.bf16.mxu0 %vm1037_vm2, %v3415_v62 }
 0x349   :  { %2228 = vmatmul.mubr.bf16.gmra.mxu0 %v3417_v50  ;;  %v1563_v50 = vpop.permute.xlu1 %1562 }
 0x34a   :  { %3170 = vmatprep.mubr.msk.bf16.mxu0 %vm1037_vm2, %v3418_v23 }
 0x351   :  { %2236 = vmatmul.mubr.bf16.gmra.mxu0 %v3420_v39 }
 0x352   :  { %3171 = vmatprep.mubr.msk.bf16.mxu0 %vm1037_vm2, %v3421_v47 }
 0x359   :  { %2244 = vmatmul.mubr.bf16.gmra.mxu0 %v3423_v24 }
 0x35a   :  { %3172 = vmatprep.mubr.msk.bf16.mxu0 %vm1037_vm2, %v3424_v48 }
 0x361   :  { %2252 = vmatmul.mubr.bf16.gmra.mxu0 %v3426_v18 }
 0x362   :  { %3173 = vmatprep.mubr.msk.bf16.mxu0 %vm1037_vm2, %v3427_v26 }
 0x369   :  { %2260 = vmatmul.mubr.bf16.gmra.mxu0 %v3429_v32 }
 0x371   :  { %v2077_v16 = vpop.f32.mrf.mxu0 }
 0x372   :  { %v2078_v46 = vadd.f32 %v2077_v16, %v1518_v7 }
 0x373   :  { %v2079_v2 = vpop.f32.mrf.mxu0 }
 0x374   :  { %v2268_v17 = vmax.f32 %v2078_v46, 0.0 }
 0x375   :  { %v2080_v60 = vpop.f32.mrf.mxu0 }
 0x376   :  { %v2081_v25 = vadd.f32 %v2080_v60, %v1523_v40 }
 0x377   :  { %v2082_v19 = vpop.f32.mrf.mxu0 }
 0x378   :  { %v2269_v48 = vmax.f32 %v2081_v25, 0.0 }
 0x379   :  { %v2085_v14 = vpop.f32.mrf.mxu0 }
 0x37a   :  { %v2086_v18 = vadd.f32 %v2085_v14, %v1528_v45 }
 0x37b   :  { %v2087_v54 = vpop.f32.mrf.mxu0 }
 0x37c   :  { %v2270_v54 = vmax.f32 %v2086_v18, 0.0 }
 0x37d   :  { %v2088_v36 = vpop.f32.mrf.mxu0 }
 0x37f   :  { %v2090_v13 = vpop.f32.mrf.mxu0 }
 0x380   :  { %v2089_v13 = vadd.f32 %v2088_v36, %v1533_v57 }
 0x381   :  { %v2093_v29 = vpop.f32.mrf.mxu0 }
 0x382   :  { %v2094_v46 = vadd.f32 %v2093_v29, %v1538_v1 }
 0x383   :  { %v2095_v38 = vpop.f32.mrf.mxu0 }
 0x385   :  { %v2096_v0 = vpop.f32.mrf.mxu0 }
 0x387   :  { %v2098_v52 = vpop.f32.mrf.mxu0 }
 0x389   :  { %v2101_v21 = vpop.f32.mrf.mxu0 }
 0x38a   :  { %v2102_v1 = vadd.f32 %v2101_v21, %v4750_v61 }
 0x38b   :  { %v2103_v22 = vpop.f32.mrf.mxu0 }
 0x38d   :  { %v2104_v56 = vpop.f32.mrf.mxu0 }
 0x38f   :  { %v2106_v51 = vpop.f32.mrf.mxu0 }
 0x390   :  { %v2271_v51 = vmax.f32 %v2089_v13, 0.0 }
 0x391   :  { %v2109_v28 = vpop.f32.mrf.mxu0 }
 0x392   :  { %v2110_v33 = vadd.f32 %v2109_v28, %v1558_v11 }
 0x393   :  { %v2111_v34 = vpop.f32.mrf.mxu0 }
 0x394   :  { %v2276_v62 = vmax.f32 %v2110_v33, 0.0  ;;  %v2272_v33 = vmax.f32 %v2094_v46, 0.0  ;;  %v2097_v34 = vadd.f32 %v2096_v0, %v1543_v6  ;;  %v2274_v6 = vmax.f32 %v2102_v1, 0.0 }
 0x395   :  { %v2112_v23 = vpop.f32.mrf.mxu0  ;;  %v2105_v0 = vadd.f32 %v2104_v56, %v4752_v53 }
 0x396   :  { %v4758_v39 = vmax.f32 %v2268_v17, %v2276_v62  ;;  %v2113_v47 = vadd.f32 %v2112_v23, %v1563_v50  ;;  %v2273_v50 = vmax.f32 %v2097_v34, 0.0 }
 0x397   :  { %v2114_v24 = vpop.f32.mrf.mxu0  ;;  %v2275_v21 = vmax.f32 %v2105_v0, 0.0 }
 0x398   :  { %v2277_v26 = vmax.f32 %v2113_v47, 0.0 }
 0x399   :  { %v2117_v32 = vpop.f32.mrf.mxu0 }
 0x39a   :  { %v4760_v2 = vmax.f32 %v2269_v48, %v2277_v26  ;;  %v2118_v16 = vadd.f32 %v2117_v32, %v1568_v30 }
 0x39b   :  { %v2119_v19 = vpop.f32.mrf.mxu0 }
 0x39c   :  { %v2364_v60 = vpack.c.bf16 %v4760_v2, %v4758_v39  ;;  %v2278_v38 = vmax.f32 %v2118_v16, 0.0 }
 0x39d   :  { %v2120_v52 = vpop.f32.mrf.mxu0 }
 0x39e   :  { %v4764_v7 = vmax.f32 %v2270_v54, %v2278_v38  ;;  %v2121_v22 = vadd.f32 %v2120_v52, %v1573_v31 }
 0x39f   :  { %v2122_v40 = vpop.f32.mrf.mxu0 }
 0x3a0   :  { %v2279_v14 = vmax.f32 %v2121_v22, 0.0 }
 0x3a1   :  { %v2125_v45 = vpop.f32.mrf.mxu0 }
 0x3a2   :  { %v4766_v11 = vmax.f32 %v2271_v51, %v2279_v14  ;;  %v2126_v28 = vadd.f32 %v2125_v45, %v1578_v5 }
 0x3a3   :  { %v2127_v30 = vpop.f32.mrf.mxu0 }
 0x3a4   :  { %v2365_v36 = vpack.c.bf16 %v4766_v11, %v4764_v7  ;;  %v2280_v57 = vmax.f32 %v2126_v28, 0.0 }
 0x3a5   :  { %v2128_v17 = vpop.f32.mrf.mxu0 }
 0x3a6   :  { %v4770_v25 = vmax.f32 %v2272_v33, %v2280_v57  ;;  %v2129_v62 = vadd.f32 %v2128_v17, %v1583_v59 }
 0x3a7   :  { %v2130_v31 = vpop.f32.mrf.mxu0 }
 0x3a8   :  { %v2281_v29 = vmax.f32 %v2129_v62, 0.0 }
 0x3a9   :  { %v2133_v23 = vpop.f32.mrf.mxu0 }
 0x3aa   :  { %v4773_v47 = vmax.f32 %v2273_v50, %v2281_v29  ;;  %v2134_v5 = vadd.f32 %v2133_v23, %v4754_v42 }
 0x3ab   :  { %v2135_v24 = vpop.f32.mrf.mxu0 }
 0x3ac   :  { %v2366_v48 = vpack.c.bf16 %v4773_v47, %v4770_v25  ;;  %v2282_v18 = vmax.f32 %v2134_v5, 0.0 }
 0x3ad   :  { %v2136_v26 = vpop.f32.mrf.mxu0 }
 0x3ae   :  { %v4779_v59 = vmax.f32 %v2274_v6, %v2282_v18  ;;  %v2137_v32 = vadd.f32 %v2136_v26, %v4756_v12  ;;  %v3432_v12 = vld [vmem:[%s5034_s7 + $0x4] ss:$8 sps:$4 sm:$0xff]  }
 0x3af   :  { %v2138_v61 = vpop.f32.mrf.mxu0  ;;  %3198 = vmatprep.mubr.msk.bf16.mxu1 %vm1037_vm2, %v3432_v12 }
 0x3b0   :  { %v2283_v16 = vmax.f32 %v2137_v32, 0.0 }
 0x3b1   :  { %v2141_v19 = vpop.f32.mrf.mxu0 }
 0x3b2   :  { %v4782_v54 = vmax.f32 %v2275_v21, %v2283_v16  ;;  %v2142_v31 = vadd.f32 %v2141_v19, %v4732_v49 }
 0x3b3   :  { %v2143_v42 = vpop.f32.mrf.mxu0 }
 0x3b4   :  { %v2367_v13 = vpack.c.bf16 %v4782_v54, %v4779_v59  ;;  %v2284_v24 = vmax.f32 %v2142_v31, 0.0  ;;  %v4802_v42 = vpop.permute.xlu0 %1707 }
 0x3b5   :  { %v2144_v53 = vpop.f32.mrf.mxu0 }
 0x3b6   :  { %v2145_v50 = vadd.f32 %v2144_v53, %v4740_v20 }
 0x3b7   :  { %v2146_v56 = vpop.f32.mrf.mxu0 }
 0x3b8   :  { %v2285_v6 = vmax.f32 %v2145_v50, 0.0 }
 0x3b9   :  { %v4786_v38 = vpop.f32.mrf.mxu0 }
 0x3bb   :  { %v2151_v52 = vpop.f32.mrf.mxu0 }
 0x3bc   :  { %v4805_v52 = vpop.permute.xlu1 %1712 }
 0x3bd   :  { %v2152_v22 = vpop.f32.mrf.mxu0 }
 0x3bf   :  { %v2154_v40 = vpop.f32.mrf.mxu0 }
 0x3c1   :  { %v2157_v51 = vpop.f32.mrf.mxu0 }
 0x3c3   :  { %v2159_v46 = vpop.f32.mrf.mxu0 }
 0x3c5   :  { %v2160_v14 = vpop.f32.mrf.mxu0 }
 0x3c7   :  { %v2162_v45 = vpop.f32.mrf.mxu0 }
 0x3c9   :  { %v2165_v28 = vpop.f32.mrf.mxu0 }
 0x3ca   :  { %v2166_v40 = vadd.f32 %v2165_v28, %v4679_v27 }
 0x3cb   :  { %v2167_v30 = vpop.f32.mrf.mxu0 }
 0x3cc   :  { %v4810_v30 = vpop.permute.xlu0 %1747  ;;  %v2290_v50 = vmax.f32 %v2166_v40, 0.0 }
 0x3cd   :  { %v2168_v33 = vpop.f32.mrf.mxu0 }
 0x3ce   :  { %v2169_v46 = vadd.f32 %v2168_v33, %v4682_v35 }
 0x3cf   :  { %v2170_v34 = vpop.f32.mrf.mxu0 }
 0x3d0   :  { %v2161_v34 = vadd.f32 %v2160_v14, %v4703_v41  ;;  %v2291_v27 = vmax.f32 %v2169_v46, 0.0 }
 0x3d1   :  { %v2173_v57 = vpop.f32.mrf.mxu0 }
 0x3d2   :  { %v2174_v17 = vadd.f32 %v2173_v57, %v4742_v3  ;;  %v2289_v41 = vmax.f32 %v2161_v34, 0.0 }
 0x3d3   :  { %v2175_v62 = vpop.f32.mrf.mxu0 }
 0x3d4   :  { %v2292_v29 = vmax.f32 %v2174_v17, 0.0 }
 0x3d5   :  { %v2176_v1 = vpop.f32.mrf.mxu0 }
 0x3d6   :  { %v2177_v23 = vadd.f32 %v2176_v1, %v4745_v15  ;;  %v4796_v26 = vmax.f32 %v2284_v24, %v2292_v29  ;;  %v2153_v29 = vadd.f32 %v2152_v22, %v4719_v63 }
 0x3d7   :  { %v2178_v5 = vpop.f32.mrf.mxu0 }
 0x3d8   :  { %v2293_v0 = vmax.f32 %v2177_v23, 0.0  ;;  %v2287_v63 = vmax.f32 %v2153_v29, 0.0 }
 0x3d9   :  { %v2181_v18 = vpop.f32.mrf.mxu0 }
 0x3da   :  { %v4798_v32 = vmax.f32 %v2285_v6, %v2293_v0 }
 0x3db   :  { %v2183_v61 = vpop.f32.mrf.mxu0 }
 0x3dc   :  { %v2368_v3 = vpack.c.bf16 %v4798_v32, %v4796_v26 }
 0x3dd   :  { %v2184_v49 = vpop.f32.mrf.mxu0 }
 0x3de   :  { %v2185_v28 = vadd.f32 %v2184_v49, %v4729_v8 }
 0x3df   :  { %v2186_v21 = vpop.f32.mrf.mxu0 }
 0x3e0   :  { %v2295_v6 = vmax.f32 %v2185_v28, 0.0 }
 0x3e1   :  { %v2189_v20 = vpop.f32.mrf.mxu0 }
 0x3e2   :  { %v2190_v17 = vadd.f32 %v2189_v20, %v4705_v37  ;;  %v2182_v37 = vadd.f32 %v2181_v18, %v4721_v9 }
 0x3e3   :  { %v2191_v16 = vpop.f32.mrf.mxu0 }
 0x3e4   :  { %v2296_v23 = vmax.f32 %v2190_v17, 0.0  ;;  %v2294_v22 = vmax.f32 %v2182_v37, 0.0  ;;  %v2327_v16 = vmax.f32 %v2287_v63, %v2295_v6 }
 0x3e5   :  { %v2192_v19 = vpop.f32.mrf.mxu0 }
 0x3e6   :  { %v2193_v45 = vadd.f32 %v2192_v19, %v4708_v58  ;;  %v4817_v58 = vpop.permute.xlu1 %1752 }
 0x3e7   :  { %v2194_v15 = vpop.f32.mrf.mxu0 }
 0x3e8   :  { %v2297_v35 = vmax.f32 %v2193_v45, 0.0 }
 0x3e9   :  { %v2197_v53 = vpop.f32.mrf.mxu0 }
 0x3ea   :  { %v2198_v56 = vadd.f32 %v2197_v53, %v4684_v43  ;;  %v2158_v43 = vadd.f32 %v2157_v51, %v4695_v44  ;;  %v4823_v44 = vpop.permute.xlu0 %1697  ;;  %v2150_v51 = vadd.f32 %v4786_v38, %v4716_v10  ;;  %v2329_v0 = vmax.f32 %v2289_v41, %v2297_v35  ;;  %v4827_v20 = vpop.permute.xlu1 %1702 }
 0x3eb   :  { %v2199_v12 = vpop.f32.mrf.mxu0 }
 0x3ec   :  { %v2298_v62 = vmax.f32 %v2198_v56, 0.0  ;;  %v2288_v24 = vmax.f32 %v2158_v43, 0.0  ;;  %v2286_v18 = vmax.f32 %v2150_v51, 0.0 }
 0x3ed   :  { %v2200_v57 = vpop.f32.mrf.mxu0 }
 0x3ee   :  { %v2201_v31 = vadd.f32 %v2200_v57, %v4692_v55  ;;  %v2330_v55 = vmax.f32 %v2290_v50, %v2298_v62  ;;  %v2328_v21 = vmax.f32 %v2288_v24, %v2296_v23  ;;  %v4830_v15 = vpop.permute.xlu0 %1737  ;;  %v2326_v38 = vmax.f32 %v2286_v18, %v2294_v22  ;;  %v1743_v40 = vpop.permute.xlu1 %1742 }
 0x3ef   :  { %v2202_v1 = vpop.f32.mrf.mxu0 }
 0x3f0   :  { %v2299_v33 = vmax.f32 %v2201_v31, 0.0  ;;  %v2370_v19 = vpack.c.bf16 %v2329_v0, %v2328_v21  ;;  %v2369_v56 = vpack.c.bf16 %v2327_v16, %v2326_v38 }
 0x3f1   :  { %v4820_v14 = vpop.f32.mrf.mxu0 }
 0x3f2   :  { %v2331_v5 = vmax.f32 %v2291_v27, %v2299_v33  ;;  %v4837_v46 = vpop.permute.xlu0 %1687  ;;  %v4843_v57 = vpop.permute.xlu1 %1692 }
 0x3f3   :  { %v2207_v8 = vpop.f32.mrf.mxu0 }
 0x3f4   :  { %v2371_v61 = vpack.c.bf16 %v2331_v5, %v2330_v55 }
 0x3f5   :  { %v2208_v49 = vpop.f32.mrf.mxu0 }
 0x3f6   :  { %2665 = vmatpush1.bf16.msra.mxu1 %v2371_v61  ;;  %v4846_v62 = vpop.permute.xlu0 %1727  ;;  %v1733_v50 = vpop.permute.xlu1 %1732 }
 0x3f7   :  { %v2210_v9 = vpop.f32.mrf.mxu0  ;;  %2666 = vmatprep.subr.bf16.mxu1 %v3494_v4 }
 0x3f9   :  { %v4832_v10 = vpop.f32.mrf.mxu0 }
 0x3fa   :  { %2667 = vmatpush1.bf16.msra.mxu1 %v2370_v19  ;;  %v1678_v26 = vpop.permute.xlu0 %1677  ;;  %v1683_v59 = vpop.permute.xlu1 %1682 }
 0x3fb   :  { %v2215_v53 = vpop.f32.mrf.mxu0  ;;  %2668 = vmatprep.subr.bf16.mxu1 %v3494_v4  ;;  %v2206_v47 = vadd.f32 %v4820_v14, %v1678_v26 }
 0x3fd   :  { %v4835_v12 = vpop.f32.mrf.mxu0  ;;  %v2300_v29 = vmax.f32 %v2206_v47, 0.0  ;;  %v3439_v47 = vld [vmem:[%s5034_s7 + $0x34] ss:$8 sps:$4 sm:$0xff]  }
 0x3fe   :  { %2669 = vmatpush1.bf16.msra.mxu1 %v2369_v56  ;;  %v1723_v35 = vpop.permute.xlu1 %1722 }
 0x3ff   :  { %v2218_v45 = vpop.f32.mrf.mxu0  ;;  %2670 = vmatprep.subr.bf16.mxu1 %v3494_v4 }
 0x401   :  { %v2221_v34 = vpop.f32.mrf.mxu0 }
 0x402   :  { %2671 = vmatpush1.bf16.msra.mxu1 %v2368_v3  ;;  %v2222_v53 = vadd.f32 %v2221_v34, %v4823_v44 }
 0x403   :  { %v2223_v17 = vpop.f32.mrf.mxu0  ;;  %2672 = vmatprep.subr.bf16.mxu1 %v3494_v4 }
 0x404   :  { %v2304_v26 = vmax.f32 %v2222_v53, 0.0 }
 0x405   :  { %v2224_v31 = vpop.f32.mrf.mxu0 }
 0x406   :  { %2673 = vmatpush1.bf16.msra.mxu1 %v2367_v13  ;;  %v1718_v13 = vpop.permute.xlu0 %1717  ;;  %v2225_v9 = vadd.f32 %v2224_v31, %v4827_v20 }
 0x407   :  { %v2226_v43 = vpop.f32.mrf.mxu0  ;;  %2674 = vmatprep.subr.bf16.mxu1 %v3494_v4 }
 0x409   :  { %v2229_v1 = vpop.f32.mrf.mxu0 }
 0x40a   :  { %2675 = vmatpush1.bf16.msra.mxu1 %v2366_v48  ;;  %v2209_v48 = vadd.f32 %v2208_v49, %v1683_v59  ;;  %v2230_v49 = vadd.f32 %v2229_v1, %v4802_v42 }
 0x40b   :  { %v2231_v32 = vpop.f32.mrf.mxu0  ;;  %2676 = vmatprep.subr.bf16.mxu1 %v3494_v4 }
 0x40c   :  { %v2301_v41 = vmax.f32 %v2209_v48, 0.0  ;;  %v2306_v56 = vmax.f32 %v2230_v49, 0.0  ;;  %v3441_v48 = vld [vmem:[%s5034_s7 + $0x30] ss:$8 sps:$4 sm:$0xff]  }
 0x40d   :  { %v2232_v3 = vpop.f32.mrf.mxu0 }
 0x40e   :  { %2677 = vmatpush1.bf16.msra.mxu1 %v2365_v36  ;;  %v2233_v22 = vadd.f32 %v2232_v3, %v4805_v52  ;;  %v2217_v52 = vadd.f32 %v4835_v12, %v4843_v57 }
 0x40f   :  { %v2234_v54 = vpop.f32.mrf.mxu0  ;;  %2678 = vmatprep.subr.bf16.mxu1 %v3494_v4 }
 0x410   :  { %v2307_v17 = vmax.f32 %v2233_v22, 0.0  ;;  %v2303_v3 = vmax.f32 %v2217_v52, 0.0 }
 0x411   :  { %v2237_v27 = vpop.f32.mrf.mxu0 }
 0x412   :  { %v2238_v28 = vadd.f32 %v2237_v27, %v1718_v13  ;;  %2679 = vmatpush1.bf16.msra.mxu1 %v2364_v60  ;;  %v3435_v27 = vld [vmem:[%s5034_s7 + $0x10] ss:$8 sps:$4 sm:$0xff]  }
 0x413   :  { %v2239_v25 = vpop.f32.mrf.mxu0  ;;  %2688 = vmatprep.subr.bf16.mxu1 %v3494_v4 }
 0x414   :  { %v2308_v11 = vmax.f32 %v2238_v28, 0.0  ;;  %v3436_v28 = vld [vmem:[%s5034_s7 + $0x24] ss:$8 sps:$4 sm:$0xff]   ;;  %v3438_v25 = vld [vmem:[%s5034_s7 + $0x20] ss:$8 sps:$4 sm:$0xff]  }
 0x415   :  { %v2240_v7 = vpop.f32.mrf.mxu0 }
 0x416   :  { %v2241_v36 = vadd.f32 %v2240_v7, %v1723_v35  ;;  %v2332_v55 = vmax.f32 %v2300_v29, %v2308_v11  ;;  %v3442_v35 = vld [vmem:[%s5034_s7 + $0x44] ss:$8 sps:$4 sm:$0xff]   ;;  %v3444_v7 = vld [vmem:[%s5034_s7 + $0x40] ss:$8 sps:$4 sm:$0xff]   ;;  %v3445_v11 = vld [vmem:[%s5034_s7 + $0x54] ss:$8 sps:$4 sm:$0xff]  }
 0x417   :  { %v2242_v33 = vpop.f32.mrf.mxu0  ;;  %v3450_v29 = vld [vmem:[%s5034_s7 + $0x60] ss:$8 sps:$4 sm:$0xff]  }
 0x418   :  { %v2309_v37 = vmax.f32 %v2241_v36, 0.0  ;;  %v3447_v36 = vld [vmem:[%s5034_s7 + $0x50] ss:$8 sps:$4 sm:$0xff]   ;;  %v3448_v33 = vld [vmem:[%s5034_s7 + $0x64] ss:$8 sps:$4 sm:$0xff]  }
 0x419   :  { %v2245_v23 = vpop.f32.mrf.mxu0 }
 0x41a   :  { %v2333_v5 = vmax.f32 %v2301_v41, %v2309_v37  ;;  %v2246_v20 = vadd.f32 %v2245_v23, %v4846_v62  ;;  %v3451_v41 = vld [vmem:[%s5034_s7 + $0x74] ss:$8 sps:$4 sm:$0xff]   ;;  %v3453_v37 = vld [vmem:[%s5034_s7 + $0x70] ss:$8 sps:$4 sm:$0xff]   ;;  %v3454_v23 = vld [vmem:[%s5034_s7 + $0x84] ss:$8 sps:$4 sm:$0xff]  }
 0x41b   :  { %v2247_v51 = vpop.f32.mrf.mxu0 }
 0x41c   :  { %v2372_v39 = vpack.c.bf16 %v2333_v5, %v2332_v55  ;;  %v3456_v55 = vld [vmem:[%s5034_s7 + $0x80] ss:$8 sps:$4 sm:$0xff]   ;;  %v3457_v5 = vld [vmem:[%s5034_s7 + $0x94] ss:$8 sps:$4 sm:$0xff]   ;;  %v3459_v51 = vld [vmem:[%s5034_s7 + $0x90] ss:$8 sps:$4 sm:$0xff]  }
 0x41d   :  { %v2248_v2 = vpop.f32.mrf.mxu0 }
 0x41f   :  { %v2250_v60 = vpop.f32.mrf.mxu0 }
 0x420   :  { %v3463_v60 = vld [vmem:[%s5034_s7 + $0xb4] ss:$8 sps:$4 sm:$0xff]  }
 0x421   :  { %v2253_v8 = vpop.f32.mrf.mxu0 }
 0x422   :  { %v2254_v16 = vadd.f32 %v2253_v8, %v4830_v15  ;;  %v3465_v8 = vld [vmem:[%s5034_s7 + $0xb0] ss:$8 sps:$4 sm:$0xff]  }
 0x423   :  { %v2255_v24 = vpop.f32.mrf.mxu0 }
 0x424   :  { %v2312_v31 = vmax.f32 %v2254_v16, 0.0  ;;  %v2473_v24 = vpop.permute.xlu0 %2472 }
 0x425   :  { %v2256_v6 = vpop.f32.mrf.mxu0 }
 0x426   :  { %v2257_v21 = vadd.f32 %v2256_v6, %v1743_v40  ;;  %v2305_v40 = vmax.f32 %v2225_v9, 0.0  ;;  %v2336_v59 = vmax.f32 %v2304_v26, %v2312_v31  ;;  %v2478_v6 = vpop.permute.xlu1 %2477 }
 0x427   :  { %v2258_v14 = vpop.f32.mrf.mxu0 }
 0x428   :  { %v2313_v43 = vmax.f32 %v2257_v21, 0.0  ;;  %v2463_v14 = vpop.permute.xlu0 %2462  ;;  %v3468_v21 = vld [vmem:[%s5036_s9 + $0x4] ss:$8 sps:$4 sm:$0xff]  }
 0x429   :  { %v2261_v0 = vpop.f32.mrf.mxu0  ;;  %3214 = vmatprep.mubr.msk.bf16.mxu0 %vm1037_vm2, %v3468_v21 }
 0x42a   :  { %v2262_v61 = vadd.f32 %v2261_v0, %v4810_v30  ;;  %v2249_v30 = vadd.f32 %v2248_v2, %v1733_v50  ;;  %v2337_v34 = vmax.f32 %v2305_v40, %v2313_v43  ;;  %v2310_v50 = vmax.f32 %v2246_v20, 0.0  ;;  %v3462_v2 = vld [vmem:[%s5034_s7 + $0xa0] ss:$8 sps:$4 sm:$0xff]   ;;  %v2468_v0 = vpop.permute.xlu1 %2467 }
 0x42b   :  { %v2263_v63 = vpop.f32.mrf.mxu0 }
 0x42c   :  { %v2314_v19 = vmax.f32 %v2262_v61, 0.0  ;;  %v2311_v44 = vmax.f32 %v2249_v30, 0.0  ;;  %v2374_v54 = vpack.c.bf16 %v2337_v34, %v2336_v59  ;;  %v4960_v61 = vpop.permute.xlu0 %2452 }
 0x42d   :  { %v2264_v18 = vpop.f32.mrf.mxu0 }
 0x42e   :  { %v2265_v38 = vadd.f32 %v2264_v18, %v4817_v58  ;;  %v2338_v1 = vmax.f32 %v2306_v56, %v2314_v19  ;;  %v2214_v58 = vadd.f32 %v4832_v10, %v4837_v46  ;;  %v2335_v57 = vmax.f32 %v2303_v3, %v2311_v44  ;;  %v3430_v10 = vld [vmem:[%s5034_s7] ss:$8 sps:$4 sm:$0xff]   ;;  %v3433_v46 = vld [vmem:[%s5034_s7 + $0x14] ss:$8 sps:$4 sm:$0xff]   ;;  %v2458_v49 = vpop.permute.xlu1 %2457 }
 0x42f   :  { %v2266_v45 = vpop.f32.mrf.mxu0 }
 0x430   :  { %v2315_v42 = vmax.f32 %v2265_v38, 0.0  ;;  %v2302_v12 = vmax.f32 %v2214_v58, 0.0  ;;  %v4962_v63 = vpop.permute.xlu0 %2442 }
 0x432   :  { %v2339_v15 = vmax.f32 %v2307_v17, %v2315_v42  ;;  %v2334_v62 = vmax.f32 %v2302_v12, %v2310_v50  ;;  %v4964_v22 = vpop.permute.xlu1 %2447 }
 0x434   :  { %v2375_v32 = vpack.c.bf16 %v2339_v15, %v2338_v1  ;;  %v2373_v13 = vpack.c.bf16 %v2335_v57, %v2334_v62  ;;  %v4969_v9 = vpop.permute.xlu0 %2432 }
 0x436   :  { %2689 = vmatpush2.bf16.msra.mxu1 %v2375_v32  ;;  %v4972_v18 = vpop.permute.xlu1 %2437 }
 0x437   :  { %2690 = vmatprep.subr.bf16.mxu1 %v3494_v4 }
 0x438   :  { %v4974_v16 = vpop.permute.xlu0 %2422 }
 0x43a   :  { %2691 = vmatpush2.bf16.msra.mxu1 %v2374_v54  ;;  %v4976_v19 = vpop.permute.xlu1 %2427 }
 0x43b   :  { %2692 = vmatprep.subr.bf16.mxu1 %v3494_v4 }
 0x43c   :  { %v2413_v38 = vpop.permute.xlu0 %2412 }
 0x43e   :  { %2693 = vmatpush2.bf16.msra.mxu1 %v2373_v13  ;;  %v2418_v53 = vpop.permute.xlu1 %2417 }
 0x43f   :  { %2694 = vmatprep.subr.bf16.mxu1 %v3494_v4 }
 0x440   :  { %v2403_v45 = vpop.permute.xlu0 %2402 }
 0x442   :  { %2695 = vmatpush2.bf16.msra.mxu1 %v2372_v39  ;;  %v3460_v39 = vld [vmem:[%s5034_s7 + $0xa4] ss:$8 sps:$4 sm:$0xff]   ;;  %v2408_v43 = vpop.permute.xlu1 %2407 }
 0x445   :  { %2697 = vmatmul.mubr.bf16.vlgmr.msra.gmra.mxu1 %v3430_v10 }
 0x446   :  { %3199 = vmatprep.mubr.msk.bf16.mxu1 %vm1037_vm2, %v3433_v46 }
 0x44d   :  { %2705 = vmatmul.mubr.bf16.gmra.mxu1 %v3435_v27 }
 0x44e   :  { %3200 = vmatprep.mubr.msk.bf16.mxu1 %vm1037_vm2, %v3436_v28 }
 0x455   :  { %2713 = vmatmul.mubr.bf16.gmra.mxu1 %v3438_v25 }
 0x456   :  { %3201 = vmatprep.mubr.msk.bf16.mxu1 %vm1037_vm2, %v3439_v47 }
 0x45d   :  { %2721 = vmatmul.mubr.bf16.gmra.mxu1 %v3441_v48 }
 0x45e   :  { %3202 = vmatprep.mubr.msk.bf16.mxu1 %vm1037_vm2, %v3442_v35 }
 0x465   :  { %2729 = vmatmul.mubr.bf16.gmra.mxu1 %v3444_v7 }
 0x466   :  { %3203 = vmatprep.mubr.msk.bf16.mxu1 %vm1037_vm2, %v3445_v11 }
 0x46d   :  { %2737 = vmatmul.mubr.bf16.gmra.mxu1 %v3447_v36 }
 0x46e   :  { %3204 = vmatprep.mubr.msk.bf16.mxu1 %vm1037_vm2, %v3448_v33 }
 0x475   :  { %2745 = vmatmul.mubr.bf16.gmra.mxu1 %v3450_v29 }
 0x476   :  { %3205 = vmatprep.mubr.msk.bf16.mxu1 %vm1037_vm2, %v3451_v41 }
 0x47d   :  { %2753 = vmatmul.mubr.bf16.gmra.mxu1 %v3453_v37 }
 0x47e   :  { %3206 = vmatprep.mubr.msk.bf16.mxu1 %vm1037_vm2, %v3454_v23 }
 0x485   :  { %2761 = vmatmul.mubr.bf16.gmra.mxu1 %v3456_v55 }
 0x486   :  { %3207 = vmatprep.mubr.msk.bf16.mxu1 %vm1037_vm2, %v3457_v5 }
 0x48d   :  { %2769 = vmatmul.mubr.bf16.gmra.mxu1 %v3459_v51 }
 0x48e   :  { %3208 = vmatprep.mubr.msk.bf16.mxu1 %vm1037_vm2, %v3460_v39 }
 0x495   :  { %2777 = vmatmul.mubr.bf16.gmra.mxu1 %v3462_v2 }
 0x496   :  { %3209 = vmatprep.mubr.msk.bf16.mxu1 %vm1037_vm2, %v3463_v60 }
 0x49d   :  { %2785 = vmatmul.mubr.bf16.gmra.mxu1 %v3465_v8 }
 0x505   :  { %v2698_v56 = vpop.f32.mrf.mxu1 }
 0x506   :  { %v2699_v30 = vadd.f32 %v2698_v56, %v2403_v45 }
 0x507   :  { %v2700_v17 = vpop.f32.mrf.mxu1 }
 0x508   :  { %v2793_v20 = vmax.f32 %v2699_v30, 0.0 }
 0x509   :  { %v2701_v42 = vpop.f32.mrf.mxu1 }
 0x50a   :  { %v2702_v52 = vadd.f32 %v2701_v42, %v2408_v43 }
 0x50b   :  { %v2703_v40 = vpop.f32.mrf.mxu1 }
 0x50c   :  { %v2794_v31 = vmax.f32 %v2702_v52, 0.0 }
 0x50d   :  { %v2706_v1 = vpop.f32.mrf.mxu1 }
 0x50e   :  { %v4978_v15 = vpack.c.bf16 %v2794_v31, %v2793_v20  ;;  %v2707_v26 = vadd.f32 %v2706_v1, %v2413_v38 }
 0x50f   :  { %v2708_v58 = vpop.f32.mrf.mxu1 }
 0x510   :  { %v2795_v3 = vmax.f32 %v2707_v26, 0.0 }
 0x511   :  { %v2709_v44 = vpop.f32.mrf.mxu1 }
 0x512   :  { %v2710_v34 = vadd.f32 %v2709_v44, %v2418_v53 }
 0x513   :  { %v2711_v32 = vpop.f32.mrf.mxu1 }
 0x514   :  { %v2796_v50 = vmax.f32 %v2710_v34, 0.0 }
 0x515   :  { %v4980_v59 = vpop.f32.mrf.mxu1 }
 0x516   :  { %v4982_v12 = vpack.c.bf16 %v2796_v50, %v2795_v3  ;;  %v2715_v50 = vadd.f32 %v4980_v59, %v4974_v16 }
 0x517   :  { %v2716_v57 = vpop.f32.mrf.mxu1 }
 0x519   :  { %v2717_v54 = vpop.f32.mrf.mxu1 }
 0x51a   :  { %v2718_v34 = vadd.f32 %v2717_v54, %v4976_v19 }
 0x51b   :  { %v2719_v62 = vpop.f32.mrf.mxu1 }
 0x51c   :  { %v2798_v62 = vmax.f32 %v2718_v34, 0.0 }
 0x51d   :  { %v2722_v13 = vpop.f32.mrf.mxu1 }
 0x51e   :  { %v2723_v26 = vadd.f32 %v2722_v13, %v4969_v9  ;;  %v2518_v13 = vpop.permute.xlu1 %2517 }
 0x51f   :  { %v2724_v10 = vpop.f32.mrf.mxu1 }
 0x520   :  { %v2799_v57 = vmax.f32 %v2723_v26, 0.0 }
 0x521   :  { %v2725_v46 = vpop.f32.mrf.mxu1 }
 0x523   :  { %v2727_v27 = vpop.f32.mrf.mxu1 }
 0x524   :  { %v2513_v27 = vpop.permute.xlu0 %2512 }
 0x525   :  { %v2730_v28 = vpop.f32.mrf.mxu1 }
 0x526   :  { %v2731_v40 = vadd.f32 %v2730_v28, %v4962_v63 }
 0x527   :  { %v2732_v25 = vpop.f32.mrf.mxu1 }
 0x528   :  { %v2801_v44 = vmax.f32 %v2731_v40, 0.0  ;;  %v2508_v25 = vpop.permute.xlu1 %2507  ;;  %v2503_v59 = vpop.permute.xlu0 %2502 }
 0x529   :  { %v2733_v47 = vpop.f32.mrf.mxu1 }
 0x52b   :  { %v2735_v48 = vpop.f32.mrf.mxu1 }
 0x52d   :  { %v2738_v35 = vpop.f32.mrf.mxu1 }
 0x52e   :  { %v2739_v43 = vadd.f32 %v2738_v35, %v4960_v61  ;;  %v2726_v61 = vadd.f32 %v2725_v46, %v4972_v18  ;;  %v2797_v46 = vmax.f32 %v2715_v50, 0.0 }
 0x52f   :  { %v2740_v7 = vpop.f32.mrf.mxu1 }
 0x530   :  { %v2803_v20 = vmax.f32 %v2739_v43, 0.0  ;;  %v2800_v63 = vmax.f32 %v2726_v61, 0.0  ;;  %v2823_v19 = vpack.c.bf16 %v2798_v62, %v2797_v46 }
 0x531   :  { %v2741_v11 = vpop.f32.mrf.mxu1 }
 0x532   :  { %v2742_v56 = vadd.f32 %v2741_v11, %v2458_v49  ;;  %v2824_v9 = vpack.c.bf16 %v2800_v63, %v2799_v57 }
 0x533   :  { %v2743_v36 = vpop.f32.mrf.mxu1 }
 0x534   :  { %v2498_v36 = vpop.permute.xlu1 %2497 }
 0x535   :  { %v2746_v33 = vpop.f32.mrf.mxu1 }
 0x536   :  { %v2747_v8 = vadd.f32 %v2746_v33, %v2463_v14 }
 0x537   :  { %v2748_v29 = vpop.f32.mrf.mxu1 }
 0x538   :  { %v2805_v42 = vmax.f32 %v2747_v8, 0.0 }
 0x539   :  { %v2749_v41 = vpop.f32.mrf.mxu1 }
 0x53a   :  { %v2750_v39 = vadd.f32 %v2749_v41, %v2468_v0 }
 0x53b   :  { %v2751_v37 = vpop.f32.mrf.mxu1 }
 0x53c   :  { %v2806_v45 = vmax.f32 %v2750_v39, 0.0 }
 0x53d   :  { %v2754_v23 = vpop.f32.mrf.mxu1 }
 0x53e   :  { %v2755_v5 = vadd.f32 %v2754_v23, %v2473_v24  ;;  %v2734_v24 = vadd.f32 %v2733_v47, %v4964_v22  ;;  %v2827_v14 = vpack.c.bf16 %v2806_v45, %v2805_v42  ;;  %v2493_v23 = vpop.permute.xlu0 %2492  ;;  %v3466_v42 = vld [vmem:[%s5036_s9] ss:$8 sps:$4 sm:$0xff]  }
 0x53f   :  { %v2756_v55 = vpop.f32.mrf.mxu1 }
 0x540   :  { %v2807_v21 = vmax.f32 %v2755_v5, 0.0  ;;  %v2802_v31 = vmax.f32 %v2734_v24, 0.0  ;;  %v3495_v24 = vmov 0.0  }
 0x541   :  { %v2757_v51 = vpop.f32.mrf.mxu1 }
 0x542   :  { %v2758_v2 = vadd.f32 %v2757_v51, %v2478_v6  ;;  %v2804_v6 = vmax.f32 %v2742_v56, 0.0  ;;  %v2825_v32 = vpack.c.bf16 %v2802_v31, %v2801_v44 }
 0x543   :  { %v2759_v60 = vpop.f32.mrf.mxu1 }
 0x544   :  { %v2808_v38 = vmax.f32 %v2758_v2, 0.0  ;;  %v2826_v1 = vpack.c.bf16 %v2804_v6, %v2803_v20  ;;  %v2488_v2 = vpop.permute.xlu1 %2487 }
 0x545   :  { %v4984_v53 = vpop.f32.mrf.mxu1 }
 0x546   :  { %v2828_v17 = vpack.c.bf16 %v2808_v38, %v2807_v21  ;;  %v2483_v38 = vpop.permute.xlu0 %2482 }
 0x547   :  { %v2764_v30 = vpop.f32.mrf.mxu1  ;;  %v2763_v56 = vadd.f32 %v4984_v53, %v2483_v38  ;;  %v3469_v53 = vld [vmem:[%s5036_s9 + $0x14] ss:$8 sps:$4 sm:$0xff]  }
 0x548   :  { %2882 = vmatpush1.bf16.msra.mxu0 %v2828_v17 }
 0x549   :  { %v4987_v52 = vpop.f32.mrf.mxu1  ;;  %2883 = vmatprep.subr.bf16.mxu0 %v3494_v4  ;;  %v2809_v30 = vmax.f32 %v2763_v56, 0.0 }
 0x54a   :  { %v2766_v60 = vadd.f32 %v4987_v52, %v2488_v2  ;;  %v3471_v52 = vld [vmem:[%s5036_s9 + $0x10] ss:$8 sps:$4 sm:$0xff]   ;;  %v2850_v20 = vpop.permute.xlu0 %2849 }
 0x54b   :  { %v2767_v0 = vpop.f32.mrf.mxu1 }
 0x54c   :  { %2884 = vmatpush1.bf16.msra.mxu0 %v2827_v14  ;;  %v2810_v45 = vmax.f32 %v2766_v60, 0.0  ;;  %v2855_v0 = vpop.permute.xlu1 %2854 }
 0x54d   :  { %v2770_v49 = vpop.f32.mrf.mxu1  ;;  %2885 = vmatprep.subr.bf16.mxu0 %v3494_v4 }
 0x54e   :  { %v2771_v39 = vadd.f32 %v2770_v49, %v2493_v23  ;;  %v2829_v43 = vpack.c.bf16 %v2810_v45, %v2809_v30 }
 0x54f   :  { %v2772_v58 = vpop.f32.mrf.mxu1 }
 0x550   :  { %2886 = vmatpush1.bf16.msra.mxu0 %v2826_v1  ;;  %v2845_v1 = vpop.permute.xlu1 %2844 }
 0x551   :  { %v2773_v22 = vpop.f32.mrf.mxu1  ;;  %2887 = vmatprep.subr.bf16.mxu0 %v3494_v4 }
 0x552   :  { %v2774_v55 = vadd.f32 %v2773_v22, %v2498_v36  ;;  %v2840_v22 = vpop.permute.xlu0 %2839 }
 0x553   :  { %v2775_v3 = vpop.f32.mrf.mxu1 }
 0x554   :  { %2888 = vmatpush1.bf16.msra.mxu0 %v2825_v32  ;;  %v2812_v8 = vmax.f32 %v2774_v55, 0.0 }
 0x555   :  { %v2778_v18 = vpop.f32.mrf.mxu1  ;;  %2889 = vmatprep.subr.bf16.mxu0 %v3494_v4 }
 0x556   :  { %v2779_v29 = vadd.f32 %v2778_v18, %v2503_v59 }
 0x557   :  { %v2780_v10 = vpop.f32.mrf.mxu1 }
 0x558   :  { %2890 = vmatpush1.bf16.msra.mxu0 %v2824_v9  ;;  %v2934_v9 = vld [vmem:[%s5038_s11] sm:$0x1] }
 0x559   :  { %v2781_v28 = vpop.f32.mrf.mxu1  ;;  %2891 = vmatprep.subr.bf16.mxu0 %v3494_v4 }
 0x55a   :  { %v2782_v7 = vadd.f32 %v2781_v28, %v2508_v25 }
 0x55b   :  { %v2783_v54 = vpop.f32.mrf.mxu1 }
 0x55c   :  { %2892 = vmatpush1.bf16.msra.mxu0 %v2823_v19  ;;  %v2814_v5 = vmax.f32 %v2782_v7, 0.0 }
 0x55d   :  { %v2786_v16 = vpop.f32.mrf.mxu1  ;;  %2893 = vmatprep.subr.bf16.mxu0 %v3494_v4 }
 0x55e   :  { %v2787_v48 = vadd.f32 %v2786_v16, %v2513_v27  ;;  %v2941_v27 = vpop.permute.xlu0 %2940 }
 0x55f   :  { %v2788_v47 = vpop.f32.mrf.mxu1 }
 0x560   :  { %2894 = vmatpush1.bf16.msra.mxu0 %v4982_v12  ;;  %v2815_v41 = vmax.f32 %v2787_v48, 0.0  ;;  %v2813_v12 = vmax.f32 %v2779_v29, 0.0 }
 0x561   :  { %v2789_v35 = vpop.f32.mrf.mxu1  ;;  %2895 = vmatprep.subr.bf16.mxu0 %v3494_v4 }
 0x562   :  { %v2790_v11 = vadd.f32 %v2789_v35, %v2518_v13  ;;  %v2831_v21 = vpack.c.bf16 %v2814_v5, %v2813_v12  ;;  %v2943_v13 = vlaneseq }
 0x563   :  { %v2791_v33 = vpop.f32.mrf.mxu1 }
 0x564   :  { %v2816_v37 = vmax.f32 %v2790_v11, 0.0  ;;  %2896 = vmatpush1.bf16.msra.mxu0 %v4978_v15  ;;  %v2811_v15 = vmax.f32 %v2771_v39, 0.0  ;;  %v2944_v10 = vshrl.u32 %v2943_v13, 7 }
 0x565   :  { %2905 = vmatprep.subr.bf16.mxu0 %v3494_v4 }
 0x566   :  { %v2832_v51 = vpack.c.bf16 %v2816_v37, %v2815_v41  ;;  %v2830_v17 = vpack.c.bf16 %v2812_v8, %v2811_v15  ;;  %v2945_v46 = vsub.s32 0, %v2944_v10 }
 0x568   :  { %2906 = vmatpush2.bf16.msra.mxu0 %v2832_v51  ;;  %v2946_v28 = vrot.slane %v2941_v27, %v2945_v46 }
 0x569   :  { %2907 = vmatprep.subr.bf16.mxu0 %v3494_v4 }
 0x56c   :  { %2908 = vmatpush2.bf16.msra.mxu0 %v2831_v21 }
 0x56d   :  { %2909 = vmatprep.subr.bf16.mxu0 %v3494_v4 }
 0x570   :  { %2910 = vmatpush2.bf16.msra.mxu0 %v2830_v17 }
 0x571   :  { %2911 = vmatprep.subr.bf16.mxu0 %v3494_v4 }
 0x574   :  { %2912 = vmatpush2.bf16.msra.mxu0 %v2829_v43 }
 0x575   :  { %3259 = vmatprep.subr.bf16.mxu0 %v3495_v24 }
 0x577   :  { %2914 = vmatmul.mubr.bf16.vlgmr.msra.gmra.mxu0 %v3466_v42 }
 0x578   :  { %3215 = vmatprep.mubr.msk.bf16.mxu0 %vm1037_vm2, %v3469_v53 }
 0x57f   :  { %2922 = vmatmul.mubr.bf16.gmra.mxu0 %v3471_v52 }
 0x580   :  { %3263 = vmatprep.mubr.msk.bf16.mxu0 %vm3496_vm3, %v3495_v24 }
 0x637   :  { %v2915_v4 = vpop.f32.mrf.mxu0 }
 0x638   :  { %v2916_v63 = vadd.f32 %v2915_v4, %v2840_v22 }
 0x639   :  { %v2917_v6 = vpop.f32.mrf.mxu0 }
 0x63a   :  { %v2930_v18 = vmax.f32 %v2916_v63, 0.0 }
 0x63b   :  { %v2918_v14 = vpop.f32.mrf.mxu0 }
 0x63c   :  { %v2919_v26 = vadd.f32 %v2918_v14, %v2845_v1 }
 0x63d   :  { %v2920_v40 = vpop.f32.mrf.mxu0 }
 0x63e   :  { %v2931_v50 = vmax.f32 %v2919_v26, 0.0 }
 0x63f   :  { %v2923_v49 = vpop.f32.mrf.mxu0 }
 0x640   :  { %v2924_v31 = vadd.f32 %v2923_v49, %v2850_v20  ;;  %v2935_v62 = vpack.c.bf16 %v2931_v50, %v2930_v18 }
 0x641   :  { %v2925_v61 = vpop.f32.mrf.mxu0 }
 0x642   :  { %v2932_v32 = vmax.f32 %v2924_v31, 0.0 }
 0x643   :  { %v2926_v58 = vpop.f32.mrf.mxu0 }
 0x644   :  { %v2927_v44 = vadd.f32 %v2926_v58, %v2855_v0 }
 0x645   :  { %v2928_v34 = vpop.f32.mrf.mxu0 }
 0x646   :  { %v2933_v3 = vmax.f32 %v2927_v44, 0.0 }
 0x648   :  { %v2936_v57 = vpack.c.bf16 %v2933_v3, %v2932_v32 }
 0x64a   :  { %3260 = vmatpush3.bf16.msra.mxu0 %v2936_v57 }
 0x64b   :  { %3261 = vmatprep.subr.bf16.mxu0 %v3495_v24 }
 0x64e   :  { %3262 = vmatpush3.bf16.msra.mxu0 %v2935_v62 }
 0x651   :  { %3264 = vmatmul.mubr.msk.bf16.vlgmr.msra.gmra.mxu0 %vm2947_vm4, %v2934_v9 }
 0x711   :  { %v2985_v19 = vpop.f32.mrf.mxu0 }
 0x712   :  { %v2986_v54 = vadd.f32 %v2985_v19, %v2946_v28 }
 0x713   :  { %v3265_v25 = vpop.f32.mrf.mxu0 }
 0x714   :  { %2991 = vst [vmem:[#allocation3] sm:$0x1] %v2986_v54 }
 0x715   :  { %v2988_v16 = vpop.f32.mrf.mxu0 }
 0x716   :  { %3483 = shalt.err (!%p3480_p4)
}
 0x717   :  { %3001 = dma.vmem_to_hbm [thread:$0]  %s2999_s4, 16, %s5040_s13, [#allocation4]   ;;  %v3266_v59 = vpop.f32.mrf.mxu0 }
 0x718   :  { %3492 = dma.done.wait [#allocation4], 16  }
 0x719   :  { %3493 = vsyncadd [#allocation4], 4294967280 }
 0x71a   :  { %3005 = vsyncpa [#allocation4], 1 }

</bundles_post_ra>
